<compile_context>
chip_gen: v7x
topology: tpu7x:2x2x1
jax: 0.10.0
libtpu: 0.0.40
codegen_flags: <defaults>
</compile_context>

<pallas_src>
import functools

import jax
import jax.numpy as jnp
from jax import lax
from jax.experimental import pallas as pl
from jax.experimental.pallas import tpu as pltpu

_LANES = 128
_SUBLANES = 8
_CHUNK_ROWS = 16                              # (16,128) = native bf16 tile
_CELLS_PER_CHUNK = _CHUNK_ROWS * _LANES       # 2048 cells per inner chunk
_MAX_CHUNKS_PER_TILE = 32                     # 64K cells/tile (~3.5 MB bf16)
_PRED_C = 21
_TGT_C = 6
_NUM_CLASSES = 11


def _iou_cases(bl, bt, bw, bh, tl, tt, tr, tb, area_t, recip):
    """Vectorized replica of yololoss.computeIOU.

    Target-side terms (tr, tb, area_t) are hoisted by the caller and shared
    between the two per-cell IOU evaluations.
    """
    br, bb = bl + bw, bt + bh
    area_b = bw * bh
    c1 = (tl <= bl) & (tt <= bt) & (tr >= br) & (tb >= bb)   # target contains pred
    c2 = (bl <= tl) & (bt <= tt) & (br >= tr) & (bb >= tb)   # pred contains target
    c3 = (br <= tl) | (tr <= bl) | (bb <= tt) | (tb <= bt)   # disjoint
    nl = jnp.maximum(bl, tl)
    nt = jnp.maximum(bt, tt)
    nw = jnp.minimum(br, tr) - nl
    nh = jnp.minimum(bb, tb) - nt
    na = nw * nh
    general = na * recip(area_b + area_t - na)
    # Keep select semantics (NOT multiply-by-mask): inf/NaN on dead branches
    # is discarded, matching the elif chain of the PyTorch reference.
    return jnp.where(c1, area_b * recip(area_t),
           jnp.where(c2, area_t * recip(area_b),
           jnp.where(c3, jnp.zeros_like(general), general)))


def _per_cell_loss(p, t, l_coord, l_noobj, recip):
    """Per-grid-cell contribution to the *unnormalized* YOLO loss.

    `p(c)` / `t(c)` return channel c as f32 arrays of identical shape.  They
    RE-READ from the underlying VMEM ref on every call (no memoized channel
    cache -> no vreg-file spills; VMEM reloads are nearly free here).
    """
    conf_t = t(4)
    coo = conf_t > 0.0
    noo = conf_t == 0.0

    # --- no-object confidence loss (both predicted confidences vs conf==0).
    d1 = p(4) - conf_t
    d2 = p(9) - conf_t
    noobj = d1 * d1 + d2 * d2

    # --- responsible-box selection via the custom IOU (target terms hoisted).
    tl, tt, tw, th = t(0), t(1), t(2), t(3)
    tr, tb = tl + tw, tt + th
    area_t = tw * th
    iou1 = _iou_cases(p(0), p(1), p(2), p(3), tl, tt, tr, tb, area_t, recip)
    iou2 = _iou_cases(p(5), p(6), p(7), p(8), tl, tt, tr, tb, area_t, recip)
    use1 = iou1 >= iou2                       # box1 wins exact ties (torch loop)
    max_iou = jnp.where(use1, iou1, iou2)

    r_c = jnp.where(use1, p(4), p(9))
    nr_c = jnp.where(use1, p(9), p(4))
    contain = (r_c - max_iou) ** 2            # responsible conf vs max IOU
    not_contain = nr_c * nr_c                 # non-responsible conf -> 0

    dx = jnp.clip(jnp.where(use1, p(0), p(5)), 0.0, 1.0) - jnp.clip(tl, 0.0, 1.0)
    dy = jnp.clip(jnp.where(use1, p(1), p(6)), 0.0, 1.0) - jnp.clip(tt, 0.0, 1.0)
    dw = (jnp.sqrt(jnp.clip(jnp.where(use1, p(2), p(7)), 0.0, 1.0))
          - jnp.sqrt(jnp.clip(tw, 0.0, 1.0)))
    dh = (jnp.sqrt(jnp.clip(jnp.where(use1, p(3), p(8)), 0.0, 1.0))
          - jnp.sqrt(jnp.clip(th, 0.0, 1.0)))
    loc = dx * dx + dy * dy + dw * dw + dh * dh

    # --- classification cross-entropy (sum reduction), logits = channels 10..20.
    # Pass 1: log-depth max tree, logits streamed straight from the ref.
    def tree_max(lo, hi):
        if hi - lo == 1:
            return p(10 + lo)
        mid = (lo + hi) // 2
        return jnp.maximum(tree_max(lo, mid), tree_max(mid, hi))
    mx = tree_max(0, _NUM_CLASSES)
    # Pass 2: streamed sum-exp + gathered logit (each logit re-read once more).
    cls_idx = t(5).astype(jnp.int32)          # .long()-style truncation
    sumexp = jnp.zeros_like(mx)
    picked = jnp.zeros_like(mx)
    for c in range(_NUM_CLASSES):
        x = p(10 + c)
        sumexp = sumexp + jnp.exp(x - mx)
        picked = picked + jnp.where(cls_idx == c, x, 0.0)
    ce = mx + jnp.log(sumexp) - picked

    # --- one fused, masked per-cell total.
    obj_terms = l_coord * loc + 2.0 * contain + not_contain + ce
    return (jnp.where(coo, obj_terms, 0.0)
            + jnp.where(noo, l_noobj * noobj, 0.0))


def _yolo_loss_kernel(pred_ref, tgt_ref, out_ref, *, l_coord, l_noobj):
    # pred_ref: (21, g, 16, 128), tgt_ref: (6, g, 16, 128) in the DMA dtype.
    # Approx reciprocal -> EUP slot instead of a multi-op VPU divide sequence.
    recip = lambda x: pl.reciprocal(x, approx=True)
    n_chunks = pred_ref.shape[1]

    def body(j, acc):
        # Channel readers re-read from VMEM each call; upcast to f32 per chunk.
        p = lambda c: pred_ref[c, j].astype(jnp.float32)     # (16, 128)
        t = lambda c: tgt_ref[c, j].astype(jnp.float32)
        per_cell = _per_cell_loss(p, t, l_coord, l_noobj, recip)  # (16, 128)
        # Fold the chunk's 16 sublane-rows into the (8,128) carry with plain
        # VPU adds (no cross-lane reduction; output store stays lane-dense).
        return acc + per_cell[:_SUBLANES, :] + per_cell[_SUBLANES:, :]

    acc = lax.fori_loop(0, n_chunks, body,
                        jnp.zeros((_SUBLANES, _LANES), jnp.float32))
    out_ref[0] = acc


@functools.partial(jax.jit, static_argnames=("l_coord", "l_noobj", "dma_dtype"))
def yolo_loss_pallas(pred, target, *, l_coord=5.0, l_noobj=0.5,
                     dma_dtype=jnp.bfloat16):
    N, S, S2, C = pred.shape
    assert S == S2 and C == _PRED_C and target.shape == (N, S, S, _TGT_C)
    M = N * S * S

    # --- tile sizing --------------------------------------------------------
    # Big grid-step tiles (amortize the ~0.35 us/step overhead), capped so the
    # double-buffered bf16 working set stays ~7 MB (well under v7x's smaller
    # VMEM), and an even tile count so both v7x TensorCores get work.
    n_chunks_total = pl.cdiv(M, _CELLS_PER_CHUNK)
    if n_chunks_total <= 1:
        num_tiles = 1
    else:
        num_tiles = max(2, pl.cdiv(n_chunks_total, _MAX_CHUNKS_PER_TILE))
        num_tiles += num_tiles % 2
    chunks_per_tile = pl.cdiv(n_chunks_total, num_tiles)
    num_tiles = pl.cdiv(n_chunks_total, chunks_per_tile)
    total_chunks = num_tiles * chunks_per_tile
    m_pad = total_chunks * _CELLS_PER_CHUNK

    # --- single-pass layout prep (pad + cast + transpose fuse under jit) -----
    def to_channel_major(x, channels):
        x = x.reshape(M, channels)
        if m_pad != M:
            # Padded cells have conf==0 and zero preds -> contribute 0 loss.
            x = jnp.pad(x, ((0, m_pad - M), (0, 0)))
        x = x.astype(dma_dtype)              # bf16 DMA path; f32 math in-kernel
        x = jnp.transpose(x, (1, 0))         # one fused copy (M_pad,C)->(C,M_pad)
        return x.reshape(channels, total_chunks, _CHUNK_ROWS, _LANES)

    pred_cm = to_channel_major(pred, _PRED_C)
    tgt_cm = to_channel_major(target, _TGT_C)

    kernel = functools.partial(_yolo_loss_kernel, l_coord=float(l_coord),
                               l_noobj=float(l_noobj))

    bytes_in = (pred_cm.size * pred_cm.dtype.itemsize
                + tgt_cm.size * tgt_cm.dtype.itemsize)
    cost = pl.CostEstimate(
        flops=230 * m_pad,                   # ~230 VPU ops / cell
        transcendentals=22 * m_pad,          # 11 exp + 1 log + 4 sqrt + 6 recip
        bytes_accessed=int(bytes_in + num_tiles * _SUBLANES * _LANES * 4),
    )

    g = chunks_per_tile
    partials = pl.pallas_call(
        kernel,
        out_shape=jax.ShapeDtypeStruct((num_tiles, _SUBLANES, _LANES),
                                       jnp.float32),
        grid=(num_tiles,),
        in_specs=[pl.BlockSpec((_PRED_C, g, _CHUNK_ROWS, _LANES),
                               lambda i: (0, i, 0, 0)),
                  pl.BlockSpec((_TGT_C, g, _CHUNK_ROWS, _LANES),
                               lambda i: (0, i, 0, 0))],
        out_specs=pl.BlockSpec((1, _SUBLANES, _LANES), lambda i: (i, 0, 0)),
        compiler_params=pltpu.CompilerParams(
            dimension_semantics=("parallel",),     # both TensorCores on v7x
            vmem_limit_bytes=32 * 1024 * 1024),    # above v5e's 16 MiB default
        cost_estimate=cost,
    )(pred_cm, tgt_cm)

    # Tiny final cross-tile / cross-lane reduction and 1/N normalization in JAX.
    return jnp.sum(partials) / jnp.float32(N)


def _yolo_loss_ref(pred, target, l_coord, l_noobj):
    """Plain-JAX reference of the same vectorized math (exact division, f32)."""
    N = pred.shape[0]
    M = N * pred.shape[1] * pred.shape[2]
    pm = jnp.transpose(pred.reshape(M, _PRED_C).astype(jnp.float32), (1, 0))
    tm = jnp.transpose(target.reshape(M, _TGT_C).astype(jnp.float32), (1, 0))
    per_cell = _per_cell_loss(lambda c: pm[c], lambda c: tm[c],
                              float(l_coord), float(l_noobj), lambda x: 1.0 / x)
    return jnp.sum(per_cell) / N


if __name__ == "__main__":
    # Module hyperparameters (yololoss has no learned weights in __init__):
    S, B, l_coord, l_noobj = 7, 2, 5.0, 0.5
    N = 2                     # pred channels = 5*B + 11 classes = 21; target = 6

    key = jax.random.PRNGKey(0)
    k_pred, k_conf, k_xy, k_wh, k_cls = jax.random.split(key, 5)

    # Predictions: arbitrary real values, as a network head would emit.
    pred = 0.5 * jax.random.normal(k_pred, (N, S, S, 5 * B + _NUM_CLASSES),
                                   dtype=jnp.float32) + 0.3

    # Targets: conf in {0,1}, xy in [0,1], wh in [0.1,0.9], class id in [0,11).
    conf = (jax.random.uniform(k_conf, (N, S, S, 1)) > 0.6).astype(jnp.float32)
    xy = jax.random.uniform(k_xy, (N, S, S, 2), dtype=jnp.float32)
    wh = jax.random.uniform(k_wh, (N, S, S, 2), minval=0.1, maxval=0.9,
                            dtype=jnp.float32)
    cls = jax.random.randint(k_cls, (N, S, S, 1), 0, _NUM_CLASSES
                             ).astype(jnp.float32)
    target = jnp.concatenate([xy, wh, conf, cls], axis=-1)       # (N, S, S, 6)

    loss = jax.block_until_ready(
        yolo_loss_pallas(pred, target, l_coord=l_coord, l_noobj=l_noobj))

    # Reference on the same bf16-rounded inputs the kernel DMAs, so the
    # comparison isolates the in-kernel approx-reciprocal / summation-order
    # differences (the bf16 DMA path itself is a deliberate perf choice).
    pred_q = pred.astype(jnp.bfloat16).astype(jnp.float32)
    target_q = target.astype(jnp.bfloat16).astype(jnp.float32)
    ref = _yolo_loss_ref(pred_q, target_q, l_coord, l_noobj)

    assert jnp.isfinite(loss), "loss is not finite"
    assert jnp.allclose(loss, ref, rtol=2e-2, atol=2e-2), (loss, ref)

    print("KERNEL_OK")
</pallas_src>

<mosaic_0001>
module attributes {stable_mosaic.version = 11 : i64} {
  func.func @_yolo_loss_kernel(%arg0: i32, %arg1: memref<21x1x16x128xbf16, #tpu.memory_space<vmem>>, %arg2: memref<6x1x16x128xbf16, #tpu.memory_space<vmem>>, %arg3: memref<1x8x128xf32, #tpu.memory_space<vmem>>) attributes {dimension_semantics = [#tpu.dimension_semantics<parallel>], iteration_bounds = array<i64: 1>, scalar_prefetch = 0 : i64, scratch_operands = 0 : i64, tpu.core_type = #tpu.core_type<tc>, window_params = [{transform_indices = @transform_0, window_bounds = array<i64: 21, 1, 16, 128>}, {transform_indices = @transform_1, window_bounds = array<i64: 6, 1, 16, 128>}, {transform_indices = @transform_2, window_bounds = array<i64: 1, 8, 128>}]} {
    %cst = arith.constant 0.000000e+00 : f32
    %0 = vector.broadcast %cst : f32 to vector<8x128xf32>
    %c0_i32 = arith.constant 0 : i32
    %c4 = arith.constant 4 : index
    %1 = arith.index_cast %c0_i32 : i32 to index
    %c0 = arith.constant 0 : index
    %c0_0 = arith.constant 0 : index
    %2 = vector.load %arg2[%c4, %1, %c0, %c0_0] : memref<6x1x16x128xbf16, #tpu.memory_space<vmem>>, vector<1x1x16x128xbf16>
    %3 = vector.shape_cast %2 : vector<1x1x16x128xbf16> to vector<16x128xbf16>
    %4 = arith.extf %3 : vector<16x128xbf16> to vector<16x128xf32>
    %cst_1 = arith.constant 0.000000e+00 : f32
    %5 = vector.broadcast %cst_1 : f32 to vector<16x128xf32>
    %6 = arith.cmpf ogt, %4, %5 : vector<16x128xf32>
    %cst_2 = arith.constant 0.000000e+00 : f32
    %7 = vector.broadcast %cst_2 : f32 to vector<16x128xf32>
    %8 = arith.cmpf oeq, %4, %7 : vector<16x128xf32>
    %c4_3 = arith.constant 4 : index
    %9 = arith.index_cast %c0_i32 : i32 to index
    %c0_4 = arith.constant 0 : index
    %c0_5 = arith.constant 0 : index
    %10 = vector.load %arg1[%c4_3, %9, %c0_4, %c0_5] : memref<21x1x16x128xbf16, #tpu.memory_space<vmem>>, vector<1x1x16x128xbf16>
    %11 = vector.shape_cast %10 : vector<1x1x16x128xbf16> to vector<16x128xbf16>
    %12 = arith.extf %11 : vector<16x128xbf16> to vector<16x128xf32>
    %13 = arith.subf %12, %4 : vector<16x128xf32>
    %c9 = arith.constant 9 : index
    %14 = arith.index_cast %c0_i32 : i32 to index
    %c0_6 = arith.constant 0 : index
    %c0_7 = arith.constant 0 : index
    %15 = vector.load %arg1[%c9, %14, %c0_6, %c0_7] : memref<21x1x16x128xbf16, #tpu.memory_space<vmem>>, vector<1x1x16x128xbf16>
    %16 = vector.shape_cast %15 : vector<1x1x16x128xbf16> to vector<16x128xbf16>
    %17 = arith.extf %16 : vector<16x128xbf16> to vector<16x128xf32>
    %18 = arith.subf %17, %4 : vector<16x128xf32>
    %19 = arith.mulf %13, %13 : vector<16x128xf32>
    %20 = arith.mulf %18, %18 : vector<16x128xf32>
    %21 = arith.addf %19, %20 : vector<16x128xf32>
    %c0_8 = arith.constant 0 : index
    %22 = arith.index_cast %c0_i32 : i32 to index
    %c0_9 = arith.constant 0 : index
    %c0_10 = arith.constant 0 : index
    %23 = vector.load %arg2[%c0_8, %22, %c0_9, %c0_10] : memref<6x1x16x128xbf16, #tpu.memory_space<vmem>>, vector<1x1x16x128xbf16>
    %24 = vector.shape_cast %23 : vector<1x1x16x128xbf16> to vector<16x128xbf16>
    %25 = arith.extf %24 : vector<16x128xbf16> to vector<16x128xf32>
    %c1 = arith.constant 1 : index
    %26 = arith.index_cast %c0_i32 : i32 to index
    %c0_11 = arith.constant 0 : index
    %c0_12 = arith.constant 0 : index
    %27 = vector.load %arg2[%c1, %26, %c0_11, %c0_12] : memref<6x1x16x128xbf16, #tpu.memory_space<vmem>>, vector<1x1x16x128xbf16>
    %28 = vector.shape_cast %27 : vector<1x1x16x128xbf16> to vector<16x128xbf16>
    %29 = arith.extf %28 : vector<16x128xbf16> to vector<16x128xf32>
    %c2 = arith.constant 2 : index
    %30 = arith.index_cast %c0_i32 : i32 to index
    %c0_13 = arith.constant 0 : index
    %c0_14 = arith.constant 0 : index
    %31 = vector.load %arg2[%c2, %30, %c0_13, %c0_14] : memref<6x1x16x128xbf16, #tpu.memory_space<vmem>>, vector<1x1x16x128xbf16>
    %32 = vector.shape_cast %31 : vector<1x1x16x128xbf16> to vector<16x128xbf16>
    %33 = arith.extf %32 : vector<16x128xbf16> to vector<16x128xf32>
    %c3 = arith.constant 3 : index
    %34 = arith.index_cast %c0_i32 : i32 to index
    %c0_15 = arith.constant 0 : index
    %c0_16 = arith.constant 0 : index
    %35 = vector.load %arg2[%c3, %34, %c0_15, %c0_16] : memref<6x1x16x128xbf16, #tpu.memory_space<vmem>>, vector<1x1x16x128xbf16>
    %36 = vector.shape_cast %35 : vector<1x1x16x128xbf16> to vector<16x128xbf16>
    %37 = arith.extf %36 : vector<16x128xbf16> to vector<16x128xf32>
    %38 = arith.addf %25, %33 : vector<16x128xf32>
    %39 = arith.addf %29, %37 : vector<16x128xf32>
    %40 = arith.mulf %33, %37 : vector<16x128xf32>
    %c0_17 = arith.constant 0 : index
    %41 = arith.index_cast %c0_i32 : i32 to index
    %c0_18 = arith.constant 0 : index
    %c0_19 = arith.constant 0 : index
    %42 = vector.load %arg1[%c0_17, %41, %c0_18, %c0_19] : memref<21x1x16x128xbf16, #tpu.memory_space<vmem>>, vector<1x1x16x128xbf16>
    %43 = vector.shape_cast %42 : vector<1x1x16x128xbf16> to vector<16x128xbf16>
    %44 = arith.extf %43 : vector<16x128xbf16> to vector<16x128xf32>
    %c1_20 = arith.constant 1 : index
    %45 = arith.index_cast %c0_i32 : i32 to index
    %c0_21 = arith.constant 0 : index
    %c0_22 = arith.constant 0 : index
    %46 = vector.load %arg1[%c1_20, %45, %c0_21, %c0_22] : memref<21x1x16x128xbf16, #tpu.memory_space<vmem>>, vector<1x1x16x128xbf16>
    %47 = vector.shape_cast %46 : vector<1x1x16x128xbf16> to vector<16x128xbf16>
    %48 = arith.extf %47 : vector<16x128xbf16> to vector<16x128xf32>
    %c2_23 = arith.constant 2 : index
    %49 = arith.index_cast %c0_i32 : i32 to index
    %c0_24 = arith.constant 0 : index
    %c0_25 = arith.constant 0 : index
    %50 = vector.load %arg1[%c2_23, %49, %c0_24, %c0_25] : memref<21x1x16x128xbf16, #tpu.memory_space<vmem>>, vector<1x1x16x128xbf16>
    %51 = vector.shape_cast %50 : vector<1x1x16x128xbf16> to vector<16x128xbf16>
    %52 = arith.extf %51 : vector<16x128xbf16> to vector<16x128xf32>
    %c3_26 = arith.constant 3 : index
    %53 = arith.index_cast %c0_i32 : i32 to index
    %c0_27 = arith.constant 0 : index
    %c0_28 = arith.constant 0 : index
    %54 = vector.load %arg1[%c3_26, %53, %c0_27, %c0_28] : memref<21x1x16x128xbf16, #tpu.memory_space<vmem>>, vector<1x1x16x128xbf16>
    %55 = vector.shape_cast %54 : vector<1x1x16x128xbf16> to vector<16x128xbf16>
    %56 = arith.extf %55 : vector<16x128xbf16> to vector<16x128xf32>
    %57 = arith.addf %44, %52 : vector<16x128xf32>
    %58 = arith.addf %48, %56 : vector<16x128xf32>
    %59 = arith.mulf %52, %56 : vector<16x128xf32>
    %60 = arith.cmpf ole, %25, %44 : vector<16x128xf32>
    %61 = arith.cmpf ole, %29, %48 : vector<16x128xf32>
    %62 = arith.andi %60, %61 : vector<16x128xi1>
    %63 = arith.cmpf oge, %38, %57 : vector<16x128xf32>
    %64 = arith.andi %62, %63 : vector<16x128xi1>
    %65 = arith.cmpf oge, %39, %58 : vector<16x128xf32>
    %66 = arith.andi %64, %65 : vector<16x128xi1>
    %67 = arith.cmpf ole, %44, %25 : vector<16x128xf32>
    %68 = arith.cmpf ole, %48, %29 : vector<16x128xf32>
    %69 = arith.andi %67, %68 : vector<16x128xi1>
    %70 = arith.cmpf oge, %57, %38 : vector<16x128xf32>
    %71 = arith.andi %69, %70 : vector<16x128xi1>
    %72 = arith.cmpf oge, %58, %39 : vector<16x128xf32>
    %73 = arith.andi %71, %72 : vector<16x128xi1>
    %74 = arith.cmpf ole, %57, %25 : vector<16x128xf32>
    %75 = arith.cmpf ole, %38, %44 : vector<16x128xf32>
    %76 = arith.ori %74, %75 : vector<16x128xi1>
    %77 = arith.cmpf ole, %58, %29 : vector<16x128xf32>
    %78 = arith.ori %76, %77 : vector<16x128xi1>
    %79 = arith.cmpf ole, %39, %48 : vector<16x128xf32>
    %80 = arith.ori %78, %79 : vector<16x128xi1>
    %81 = arith.maximumf %44, %25 : vector<16x128xf32>
    %82 = arith.maximumf %48, %29 : vector<16x128xf32>
    %83 = arith.minimumf %57, %38 : vector<16x128xf32>
    %84 = arith.subf %83, %81 : vector<16x128xf32>
    %85 = arith.minimumf %58, %39 : vector<16x128xf32>
    %86 = arith.subf %85, %82 : vector<16x128xf32>
    %87 = arith.mulf %84, %86 : vector<16x128xf32>
    %88 = arith.addf %59, %40 : vector<16x128xf32>
    %89 = arith.subf %88, %87 : vector<16x128xf32>
    %90 = tpu.reciprocal %89 {approx = true} : vector<16x128xf32> -> vector<16x128xf32>
    %91 = arith.mulf %87, %90 : vector<16x128xf32>
    %92 = tpu.reciprocal %40 {approx = true} : vector<16x128xf32> -> vector<16x128xf32>
    %93 = arith.mulf %59, %92 : vector<16x128xf32>
    %94 = tpu.reciprocal %59 {approx = true} : vector<16x128xf32> -> vector<16x128xf32>
    %95 = arith.mulf %40, %94 : vector<16x128xf32>
    %cst_29 = arith.constant 0.000000e+00 : f32
    %96 = vector.broadcast %cst_29 : f32 to vector<16x128xf32>
    %97 = arith.select %80, %96, %91 : vector<16x128xi1>, vector<16x128xf32>
    %98 = arith.select %73, %95, %97 : vector<16x128xi1>, vector<16x128xf32>
    %99 = arith.select %66, %93, %98 : vector<16x128xi1>, vector<16x128xf32>
    %c5 = arith.constant 5 : index
    %100 = arith.index_cast %c0_i32 : i32 to index
    %c0_30 = arith.constant 0 : index
    %c0_31 = arith.constant 0 : index
    %101 = vector.load %arg1[%c5, %100, %c0_30, %c0_31] : memref<21x1x16x128xbf16, #tpu.memory_space<vmem>>, vector<1x1x16x128xbf16>
    %102 = vector.shape_cast %101 : vector<1x1x16x128xbf16> to vector<16x128xbf16>
    %103 = arith.extf %102 : vector<16x128xbf16> to vector<16x128xf32>
    %c6 = arith.constant 6 : index
    %104 = arith.index_cast %c0_i32 : i32 to index
    %c0_32 = arith.constant 0 : index
    %c0_33 = arith.constant 0 : index
    %105 = vector.load %arg1[%c6, %104, %c0_32, %c0_33] : memref<21x1x16x128xbf16, #tpu.memory_space<vmem>>, vector<1x1x16x128xbf16>
    %106 = vector.shape_cast %105 : vector<1x1x16x128xbf16> to vector<16x128xbf16>
    %107 = arith.extf %106 : vector<16x128xbf16> to vector<16x128xf32>
    %c7 = arith.constant 7 : index
    %108 = arith.index_cast %c0_i32 : i32 to index
    %c0_34 = arith.constant 0 : index
    %c0_35 = arith.constant 0 : index
    %109 = vector.load %arg1[%c7, %108, %c0_34, %c0_35] : memref<21x1x16x128xbf16, #tpu.memory_space<vmem>>, vector<1x1x16x128xbf16>
    %110 = vector.shape_cast %109 : vector<1x1x16x128xbf16> to vector<16x128xbf16>
    %111 = arith.extf %110 : vector<16x128xbf16> to vector<16x128xf32>
    %c8 = arith.constant 8 : index
    %112 = arith.index_cast %c0_i32 : i32 to index
    %c0_36 = arith.constant 0 : index
    %c0_37 = arith.constant 0 : index
    %113 = vector.load %arg1[%c8, %112, %c0_36, %c0_37] : memref<21x1x16x128xbf16, #tpu.memory_space<vmem>>, vector<1x1x16x128xbf16>
    %114 = vector.shape_cast %113 : vector<1x1x16x128xbf16> to vector<16x128xbf16>
    %115 = arith.extf %114 : vector<16x128xbf16> to vector<16x128xf32>
    %116 = arith.addf %103, %111 : vector<16x128xf32>
    %117 = arith.addf %107, %115 : vector<16x128xf32>
    %118 = arith.mulf %111, %115 : vector<16x128xf32>
    %119 = arith.cmpf ole, %25, %103 : vector<16x128xf32>
    %120 = arith.cmpf ole, %29, %107 : vector<16x128xf32>
    %121 = arith.andi %119, %120 : vector<16x128xi1>
    %122 = arith.cmpf oge, %38, %116 : vector<16x128xf32>
    %123 = arith.andi %121, %122 : vector<16x128xi1>
    %124 = arith.cmpf oge, %39, %117 : vector<16x128xf32>
    %125 = arith.andi %123, %124 : vector<16x128xi1>
    %126 = arith.cmpf ole, %103, %25 : vector<16x128xf32>
    %127 = arith.cmpf ole, %107, %29 : vector<16x128xf32>
    %128 = arith.andi %126, %127 : vector<16x128xi1>
    %129 = arith.cmpf oge, %116, %38 : vector<16x128xf32>
    %130 = arith.andi %128, %129 : vector<16x128xi1>
    %131 = arith.cmpf oge, %117, %39 : vector<16x128xf32>
    %132 = arith.andi %130, %131 : vector<16x128xi1>
    %133 = arith.cmpf ole, %116, %25 : vector<16x128xf32>
    %134 = arith.cmpf ole, %38, %103 : vector<16x128xf32>
    %135 = arith.ori %133, %134 : vector<16x128xi1>
    %136 = arith.cmpf ole, %117, %29 : vector<16x128xf32>
    %137 = arith.ori %135, %136 : vector<16x128xi1>
    %138 = arith.cmpf ole, %39, %107 : vector<16x128xf32>
    %139 = arith.ori %137, %138 : vector<16x128xi1>
    %140 = arith.maximumf %103, %25 : vector<16x128xf32>
    %141 = arith.maximumf %107, %29 : vector<16x128xf32>
    %142 = arith.minimumf %116, %38 : vector<16x128xf32>
    %143 = arith.subf %142, %140 : vector<16x128xf32>
    %144 = arith.minimumf %117, %39 : vector<16x128xf32>
    %145 = arith.subf %144, %141 : vector<16x128xf32>
    %146 = arith.mulf %143, %145 : vector<16x128xf32>
    %147 = arith.addf %118, %40 : vector<16x128xf32>
    %148 = arith.subf %147, %146 : vector<16x128xf32>
    %149 = tpu.reciprocal %148 {approx = true} : vector<16x128xf32> -> vector<16x128xf32>
    %150 = arith.mulf %146, %149 : vector<16x128xf32>
    %151 = tpu.reciprocal %40 {approx = true} : vector<16x128xf32> -> vector<16x128xf32>
    %152 = arith.mulf %118, %151 : vector<16x128xf32>
    %153 = tpu.reciprocal %118 {approx = true} : vector<16x128xf32> -> vector<16x128xf32>
    %154 = arith.mulf %40, %153 : vector<16x128xf32>
    %cst_38 = arith.constant 0.000000e+00 : f32
    %155 = vector.broadcast %cst_38 : f32 to vector<16x128xf32>
    %156 = arith.select %139, %155, %150 : vector<16x128xi1>, vector<16x128xf32>
    %157 = arith.select %132, %154, %156 : vector<16x128xi1>, vector<16x128xf32>
    %158 = arith.select %125, %152, %157 : vector<16x128xi1>, vector<16x128xf32>
    %159 = arith.cmpf oge, %99, %158 : vector<16x128xf32>
    %160 = arith.select %159, %99, %158 : vector<16x128xi1>, vector<16x128xf32>
    %c4_39 = arith.constant 4 : index
    %161 = arith.index_cast %c0_i32 : i32 to index
    %c0_40 = arith.constant 0 : index
    %c0_41 = arith.constant 0 : index
    %162 = vector.load %arg1[%c4_39, %161, %c0_40, %c0_41] : memref<21x1x16x128xbf16, #tpu.memory_space<vmem>>, vector<1x1x16x128xbf16>
    %163 = vector.shape_cast %162 : vector<1x1x16x128xbf16> to vector<16x128xbf16>
    %164 = arith.extf %163 : vector<16x128xbf16> to vector<16x128xf32>
    %c9_42 = arith.constant 9 : index
    %165 = arith.index_cast %c0_i32 : i32 to index
    %c0_43 = arith.constant 0 : index
    %c0_44 = arith.constant 0 : index
    %166 = vector.load %arg1[%c9_42, %165, %c0_43, %c0_44] : memref<21x1x16x128xbf16, #tpu.memory_space<vmem>>, vector<1x1x16x128xbf16>
    %167 = vector.shape_cast %166 : vector<1x1x16x128xbf16> to vector<16x128xbf16>
    %168 = arith.extf %167 : vector<16x128xbf16> to vector<16x128xf32>
    %169 = arith.select %159, %164, %168 : vector<16x128xi1>, vector<16x128xf32>
    %c9_45 = arith.constant 9 : index
    %170 = arith.index_cast %c0_i32 : i32 to index
    %c0_46 = arith.constant 0 : index
    %c0_47 = arith.constant 0 : index
    %171 = vector.load %arg1[%c9_45, %170, %c0_46, %c0_47] : memref<21x1x16x128xbf16, #tpu.memory_space<vmem>>, vector<1x1x16x128xbf16>
    %172 = vector.shape_cast %171 : vector<1x1x16x128xbf16> to vector<16x128xbf16>
    %173 = arith.extf %172 : vector<16x128xbf16> to vector<16x128xf32>
    %c4_48 = arith.constant 4 : index
    %174 = arith.index_cast %c0_i32 : i32 to index
    %c0_49 = arith.constant 0 : index
    %c0_50 = arith.constant 0 : index
    %175 = vector.load %arg1[%c4_48, %174, %c0_49, %c0_50] : memref<21x1x16x128xbf16, #tpu.memory_space<vmem>>, vector<1x1x16x128xbf16>
    %176 = vector.shape_cast %175 : vector<1x1x16x128xbf16> to vector<16x128xbf16>
    %177 = arith.extf %176 : vector<16x128xbf16> to vector<16x128xf32>
    %178 = arith.select %159, %173, %177 : vector<16x128xi1>, vector<16x128xf32>
    %179 = arith.subf %169, %160 : vector<16x128xf32>
    %180 = arith.mulf %179, %179 : vector<16x128xf32>
    %181 = arith.mulf %178, %178 : vector<16x128xf32>
    %c0_51 = arith.constant 0 : index
    %182 = arith.index_cast %c0_i32 : i32 to index
    %c0_52 = arith.constant 0 : index
    %c0_53 = arith.constant 0 : index
    %183 = vector.load %arg1[%c0_51, %182, %c0_52, %c0_53] : memref<21x1x16x128xbf16, #tpu.memory_space<vmem>>, vector<1x1x16x128xbf16>
    %184 = vector.shape_cast %183 : vector<1x1x16x128xbf16> to vector<16x128xbf16>
    %185 = arith.extf %184 : vector<16x128xbf16> to vector<16x128xf32>
    %c5_54 = arith.constant 5 : index
    %186 = arith.index_cast %c0_i32 : i32 to index
    %c0_55 = arith.constant 0 : index
    %c0_56 = arith.constant 0 : index
    %187 = vector.load %arg1[%c5_54, %186, %c0_55, %c0_56] : memref<21x1x16x128xbf16, #tpu.memory_space<vmem>>, vector<1x1x16x128xbf16>
    %188 = vector.shape_cast %187 : vector<1x1x16x128xbf16> to vector<16x128xbf16>
    %189 = arith.extf %188 : vector<16x128xbf16> to vector<16x128xf32>
    %190 = arith.select %159, %185, %189 : vector<16x128xi1>, vector<16x128xf32>
    %cst_57 = arith.constant 0.000000e+00 : f32
    %cst_58 = arith.constant 1.000000e+00 : f32
    %191 = vector.broadcast %cst_57 : f32 to vector<16x128xf32>
    %192 = arith.maximumf %191, %190 : vector<16x128xf32>
    %193 = vector.broadcast %cst_58 : f32 to vector<16x128xf32>
    %194 = arith.minimumf %193, %192 : vector<16x128xf32>
    %cst_59 = arith.constant 0.000000e+00 : f32
    %cst_60 = arith.constant 1.000000e+00 : f32
    %195 = vector.broadcast %cst_59 : f32 to vector<16x128xf32>
    %196 = arith.maximumf %195, %25 : vector<16x128xf32>
    %197 = vector.broadcast %cst_60 : f32 to vector<16x128xf32>
    %198 = arith.minimumf %197, %196 : vector<16x128xf32>
    %199 = arith.subf %194, %198 : vector<16x128xf32>
    %c1_61 = arith.constant 1 : index
    %200 = arith.index_cast %c0_i32 : i32 to index
    %c0_62 = arith.constant 0 : index
    %c0_63 = arith.constant 0 : index
    %201 = vector.load %arg1[%c1_61, %200, %c0_62, %c0_63] : memref<21x1x16x128xbf16, #tpu.memory_space<vmem>>, vector<1x1x16x128xbf16>
    %202 = vector.shape_cast %201 : vector<1x1x16x128xbf16> to vector<16x128xbf16>
    %203 = arith.extf %202 : vector<16x128xbf16> to vector<16x128xf32>
    %c6_64 = arith.constant 6 : index
    %204 = arith.index_cast %c0_i32 : i32 to index
    %c0_65 = arith.constant 0 : index
    %c0_66 = arith.constant 0 : index
    %205 = vector.load %arg1[%c6_64, %204, %c0_65, %c0_66] : memref<21x1x16x128xbf16, #tpu.memory_space<vmem>>, vector<1x1x16x128xbf16>
    %206 = vector.shape_cast %205 : vector<1x1x16x128xbf16> to vector<16x128xbf16>
    %207 = arith.extf %206 : vector<16x128xbf16> to vector<16x128xf32>
    %208 = arith.select %159, %203, %207 : vector<16x128xi1>, vector<16x128xf32>
    %cst_67 = arith.constant 0.000000e+00 : f32
    %cst_68 = arith.constant 1.000000e+00 : f32
    %209 = vector.broadcast %cst_67 : f32 to vector<16x128xf32>
    %210 = arith.maximumf %209, %208 : vector<16x128xf32>
    %211 = vector.broadcast %cst_68 : f32 to vector<16x128xf32>
    %212 = arith.minimumf %211, %210 : vector<16x128xf32>
    %cst_69 = arith.constant 0.000000e+00 : f32
    %cst_70 = arith.constant 1.000000e+00 : f32
    %213 = vector.broadcast %cst_69 : f32 to vector<16x128xf32>
    %214 = arith.maximumf %213, %29 : vector<16x128xf32>
    %215 = vector.broadcast %cst_70 : f32 to vector<16x128xf32>
    %216 = arith.minimumf %215, %214 : vector<16x128xf32>
    %217 = arith.subf %212, %216 : vector<16x128xf32>
    %c2_71 = arith.constant 2 : index
    %218 = arith.index_cast %c0_i32 : i32 to index
    %c0_72 = arith.constant 0 : index
    %c0_73 = arith.constant 0 : index
    %219 = vector.load %arg1[%c2_71, %218, %c0_72, %c0_73] : memref<21x1x16x128xbf16, #tpu.memory_space<vmem>>, vector<1x1x16x128xbf16>
    %220 = vector.shape_cast %219 : vector<1x1x16x128xbf16> to vector<16x128xbf16>
    %221 = arith.extf %220 : vector<16x128xbf16> to vector<16x128xf32>
    %c7_74 = arith.constant 7 : index
    %222 = arith.index_cast %c0_i32 : i32 to index
    %c0_75 = arith.constant 0 : index
    %c0_76 = arith.constant 0 : index
    %223 = vector.load %arg1[%c7_74, %222, %c0_75, %c0_76] : memref<21x1x16x128xbf16, #tpu.memory_space<vmem>>, vector<1x1x16x128xbf16>
    %224 = vector.shape_cast %223 : vector<1x1x16x128xbf16> to vector<16x128xbf16>
    %225 = arith.extf %224 : vector<16x128xbf16> to vector<16x128xf32>
    %226 = arith.select %159, %221, %225 : vector<16x128xi1>, vector<16x128xf32>
    %cst_77 = arith.constant 0.000000e+00 : f32
    %cst_78 = arith.constant 1.000000e+00 : f32
    %227 = vector.broadcast %cst_77 : f32 to vector<16x128xf32>
    %228 = arith.maximumf %227, %226 : vector<16x128xf32>
    %229 = vector.broadcast %cst_78 : f32 to vector<16x128xf32>
    %230 = arith.minimumf %229, %228 : vector<16x128xf32>
    %231 = math.sqrt %230 : vector<16x128xf32>
    %cst_79 = arith.constant 0.000000e+00 : f32
    %cst_80 = arith.constant 1.000000e+00 : f32
    %232 = vector.broadcast %cst_79 : f32 to vector<16x128xf32>
    %233 = arith.maximumf %232, %33 : vector<16x128xf32>
    %234 = vector.broadcast %cst_80 : f32 to vector<16x128xf32>
    %235 = arith.minimumf %234, %233 : vector<16x128xf32>
    %236 = math.sqrt %235 : vector<16x128xf32>
    %237 = arith.subf %231, %236 : vector<16x128xf32>
    %c3_81 = arith.constant 3 : index
    %238 = arith.index_cast %c0_i32 : i32 to index
    %c0_82 = arith.constant 0 : index
    %c0_83 = arith.constant 0 : index
    %239 = vector.load %arg1[%c3_81, %238, %c0_82, %c0_83] : memref<21x1x16x128xbf16, #tpu.memory_space<vmem>>, vector<1x1x16x128xbf16>
    %240 = vector.shape_cast %239 : vector<1x1x16x128xbf16> to vector<16x128xbf16>
    %241 = arith.extf %240 : vector<16x128xbf16> to vector<16x128xf32>
    %c8_84 = arith.constant 8 : index
    %242 = arith.index_cast %c0_i32 : i32 to index
    %c0_85 = arith.constant 0 : index
    %c0_86 = arith.constant 0 : index
    %243 = vector.load %arg1[%c8_84, %242, %c0_85, %c0_86] : memref<21x1x16x128xbf16, #tpu.memory_space<vmem>>, vector<1x1x16x128xbf16>
    %244 = vector.shape_cast %243 : vector<1x1x16x128xbf16> to vector<16x128xbf16>
    %245 = arith.extf %244 : vector<16x128xbf16> to vector<16x128xf32>
    %246 = arith.select %159, %241, %245 : vector<16x128xi1>, vector<16x128xf32>
    %cst_87 = arith.constant 0.000000e+00 : f32
    %cst_88 = arith.constant 1.000000e+00 : f32
    %247 = vector.broadcast %cst_87 : f32 to vector<16x128xf32>
    %248 = arith.maximumf %247, %246 : vector<16x128xf32>
    %249 = vector.broadcast %cst_88 : f32 to vector<16x128xf32>
    %250 = arith.minimumf %249, %248 : vector<16x128xf32>
    %251 = math.sqrt %250 : vector<16x128xf32>
    %cst_89 = arith.constant 0.000000e+00 : f32
    %cst_90 = arith.constant 1.000000e+00 : f32
    %252 = vector.broadcast %cst_89 : f32 to vector<16x128xf32>
    %253 = arith.maximumf %252, %37 : vector<16x128xf32>
    %254 = vector.broadcast %cst_90 : f32 to vector<16x128xf32>
    %255 = arith.minimumf %254, %253 : vector<16x128xf32>
    %256 = math.sqrt %255 : vector<16x128xf32>
    %257 = arith.subf %251, %256 : vector<16x128xf32>
    %258 = arith.mulf %199, %199 : vector<16x128xf32>
    %259 = arith.mulf %217, %217 : vector<16x128xf32>
    %260 = arith.addf %258, %259 : vector<16x128xf32>
    %261 = arith.mulf %237, %237 : vector<16x128xf32>
    %262 = arith.addf %260, %261 : vector<16x128xf32>
    %263 = arith.mulf %257, %257 : vector<16x128xf32>
    %264 = arith.addf %262, %263 : vector<16x128xf32>
    %c10 = arith.constant 10 : index
    %265 = arith.index_cast %c0_i32 : i32 to index
    %c0_91 = arith.constant 0 : index
    %c0_92 = arith.constant 0 : index
    %266 = vector.load %arg1[%c10, %265, %c0_91, %c0_92] : memref<21x1x16x128xbf16, #tpu.memory_space<vmem>>, vector<1x1x16x128xbf16>
    %267 = vector.shape_cast %266 : vector<1x1x16x128xbf16> to vector<16x128xbf16>
    %268 = arith.extf %267 : vector<16x128xbf16> to vector<16x128xf32>
    %c11 = arith.constant 11 : index
    %269 = arith.index_cast %c0_i32 : i32 to index
    %c0_93 = arith.constant 0 : index
    %c0_94 = arith.constant 0 : index
    %270 = vector.load %arg1[%c11, %269, %c0_93, %c0_94] : memref<21x1x16x128xbf16, #tpu.memory_space<vmem>>, vector<1x1x16x128xbf16>
    %271 = vector.shape_cast %270 : vector<1x1x16x128xbf16> to vector<16x128xbf16>
    %272 = arith.extf %271 : vector<16x128xbf16> to vector<16x128xf32>
    %273 = arith.maximumf %268, %272 : vector<16x128xf32>
    %c12 = arith.constant 12 : index
    %274 = arith.index_cast %c0_i32 : i32 to index
    %c0_95 = arith.constant 0 : index
    %c0_96 = arith.constant 0 : index
    %275 = vector.load %arg1[%c12, %274, %c0_95, %c0_96] : memref<21x1x16x128xbf16, #tpu.memory_space<vmem>>, vector<1x1x16x128xbf16>
    %276 = vector.shape_cast %275 : vector<1x1x16x128xbf16> to vector<16x128xbf16>
    %277 = arith.extf %276 : vector<16x128xbf16> to vector<16x128xf32>
    %c13 = arith.constant 13 : index
    %278 = arith.index_cast %c0_i32 : i32 to index
    %c0_97 = arith.constant 0 : index
    %c0_98 = arith.constant 0 : index
    %279 = vector.load %arg1[%c13, %278, %c0_97, %c0_98] : memref<21x1x16x128xbf16, #tpu.memory_space<vmem>>, vector<1x1x16x128xbf16>
    %280 = vector.shape_cast %279 : vector<1x1x16x128xbf16> to vector<16x128xbf16>
    %281 = arith.extf %280 : vector<16x128xbf16> to vector<16x128xf32>
    %c14 = arith.constant 14 : index
    %282 = arith.index_cast %c0_i32 : i32 to index
    %c0_99 = arith.constant 0 : index
    %c0_100 = arith.constant 0 : index
    %283 = vector.load %arg1[%c14, %282, %c0_99, %c0_100] : memref<21x1x16x128xbf16, #tpu.memory_space<vmem>>, vector<1x1x16x128xbf16>
    %284 = vector.shape_cast %283 : vector<1x1x16x128xbf16> to vector<16x128xbf16>
    %285 = arith.extf %284 : vector<16x128xbf16> to vector<16x128xf32>
    %286 = arith.maximumf %281, %285 : vector<16x128xf32>
    %287 = arith.maximumf %277, %286 : vector<16x128xf32>
    %288 = arith.maximumf %273, %287 : vector<16x128xf32>
    %c15 = arith.constant 15 : index
    %289 = arith.index_cast %c0_i32 : i32 to index
    %c0_101 = arith.constant 0 : index
    %c0_102 = arith.constant 0 : index
    %290 = vector.load %arg1[%c15, %289, %c0_101, %c0_102] : memref<21x1x16x128xbf16, #tpu.memory_space<vmem>>, vector<1x1x16x128xbf16>
    %291 = vector.shape_cast %290 : vector<1x1x16x128xbf16> to vector<16x128xbf16>
    %292 = arith.extf %291 : vector<16x128xbf16> to vector<16x128xf32>
    %c16 = arith.constant 16 : index
    %293 = arith.index_cast %c0_i32 : i32 to index
    %c0_103 = arith.constant 0 : index
    %c0_104 = arith.constant 0 : index
    %294 = vector.load %arg1[%c16, %293, %c0_103, %c0_104] : memref<21x1x16x128xbf16, #tpu.memory_space<vmem>>, vector<1x1x16x128xbf16>
    %295 = vector.shape_cast %294 : vector<1x1x16x128xbf16> to vector<16x128xbf16>
    %296 = arith.extf %295 : vector<16x128xbf16> to vector<16x128xf32>
    %c17 = arith.constant 17 : index
    %297 = arith.index_cast %c0_i32 : i32 to index
    %c0_105 = arith.constant 0 : index
    %c0_106 = arith.constant 0 : index
    %298 = vector.load %arg1[%c17, %297, %c0_105, %c0_106] : memref<21x1x16x128xbf16, #tpu.memory_space<vmem>>, vector<1x1x16x128xbf16>
    %299 = vector.shape_cast %298 : vector<1x1x16x128xbf16> to vector<16x128xbf16>
    %300 = arith.extf %299 : vector<16x128xbf16> to vector<16x128xf32>
    %301 = arith.maximumf %296, %300 : vector<16x128xf32>
    %302 = arith.maximumf %292, %301 : vector<16x128xf32>
    %c18 = arith.constant 18 : index
    %303 = arith.index_cast %c0_i32 : i32 to index
    %c0_107 = arith.constant 0 : index
    %c0_108 = arith.constant 0 : index
    %304 = vector.load %arg1[%c18, %303, %c0_107, %c0_108] : memref<21x1x16x128xbf16, #tpu.memory_space<vmem>>, vector<1x1x16x128xbf16>
    %305 = vector.shape_cast %304 : vector<1x1x16x128xbf16> to vector<16x128xbf16>
    %306 = arith.extf %305 : vector<16x128xbf16> to vector<16x128xf32>
    %c19 = arith.constant 19 : index
    %307 = arith.index_cast %c0_i32 : i32 to index
    %c0_109 = arith.constant 0 : index
    %c0_110 = arith.constant 0 : index
    %308 = vector.load %arg1[%c19, %307, %c0_109, %c0_110] : memref<21x1x16x128xbf16, #tpu.memory_space<vmem>>, vector<1x1x16x128xbf16>
    %309 = vector.shape_cast %308 : vector<1x1x16x128xbf16> to vector<16x128xbf16>
    %310 = arith.extf %309 : vector<16x128xbf16> to vector<16x128xf32>
    %c20 = arith.constant 20 : index
    %311 = arith.index_cast %c0_i32 : i32 to index
    %c0_111 = arith.constant 0 : index
    %c0_112 = arith.constant 0 : index
    %312 = vector.load %arg1[%c20, %311, %c0_111, %c0_112] : memref<21x1x16x128xbf16, #tpu.memory_space<vmem>>, vector<1x1x16x128xbf16>
    %313 = vector.shape_cast %312 : vector<1x1x16x128xbf16> to vector<16x128xbf16>
    %314 = arith.extf %313 : vector<16x128xbf16> to vector<16x128xf32>
    %315 = arith.maximumf %310, %314 : vector<16x128xf32>
    %316 = arith.maximumf %306, %315 : vector<16x128xf32>
    %317 = arith.maximumf %302, %316 : vector<16x128xf32>
    %318 = arith.maximumf %288, %317 : vector<16x128xf32>
    %c5_113 = arith.constant 5 : index
    %319 = arith.index_cast %c0_i32 : i32 to index
    %c0_114 = arith.constant 0 : index
    %c0_115 = arith.constant 0 : index
    %320 = vector.load %arg2[%c5_113, %319, %c0_114, %c0_115] : memref<6x1x16x128xbf16, #tpu.memory_space<vmem>>, vector<1x1x16x128xbf16>
    %321 = vector.shape_cast %320 : vector<1x1x16x128xbf16> to vector<16x128xbf16>
    %322 = arith.extf %321 : vector<16x128xbf16> to vector<16x128xf32>
    %323 = arith.fptosi %322 : vector<16x128xf32> to vector<16x128xi32>
    %cst_116 = arith.constant 0.000000e+00 : f32
    %324 = vector.broadcast %cst_116 : f32 to vector<16x128xf32>
    %cst_117 = arith.constant 0.000000e+00 : f32
    %325 = vector.broadcast %cst_117 : f32 to vector<16x128xf32>
    %c10_118 = arith.constant 10 : index
    %326 = arith.index_cast %c0_i32 : i32 to index
    %c0_119 = arith.constant 0 : index
    %c0_120 = arith.constant 0 : index
    %327 = vector.load %arg1[%c10_118, %326, %c0_119, %c0_120] : memref<21x1x16x128xbf16, #tpu.memory_space<vmem>>, vector<1x1x16x128xbf16>
    %328 = vector.shape_cast %327 : vector<1x1x16x128xbf16> to vector<16x128xbf16>
    %329 = arith.extf %328 : vector<16x128xbf16> to vector<16x128xf32>
    %330 = arith.subf %329, %318 : vector<16x128xf32>
    %331 = math.exp %330 : vector<16x128xf32>
    %332 = arith.addf %324, %331 : vector<16x128xf32>
    %c0_i32_121 = arith.constant 0 : i32
    %333 = vector.broadcast %c0_i32_121 : i32 to vector<16x128xi32>
    %334 = arith.cmpi eq, %323, %333 : vector<16x128xi32>
    %cst_122 = arith.constant 0.000000e+00 : f32
    %335 = vector.broadcast %cst_122 : f32 to vector<16x128xf32>
    %336 = arith.select %334, %329, %335 : vector<16x128xi1>, vector<16x128xf32>
    %337 = arith.addf %325, %336 : vector<16x128xf32>
    %c11_123 = arith.constant 11 : index
    %338 = arith.index_cast %c0_i32 : i32 to index
    %c0_124 = arith.constant 0 : index
    %c0_125 = arith.constant 0 : index
    %339 = vector.load %arg1[%c11_123, %338, %c0_124, %c0_125] : memref<21x1x16x128xbf16, #tpu.memory_space<vmem>>, vector<1x1x16x128xbf16>
    %340 = vector.shape_cast %339 : vector<1x1x16x128xbf16> to vector<16x128xbf16>
    %341 = arith.extf %340 : vector<16x128xbf16> to vector<16x128xf32>
    %342 = arith.subf %341, %318 : vector<16x128xf32>
    %343 = math.exp %342 : vector<16x128xf32>
    %344 = arith.addf %332, %343 : vector<16x128xf32>
    %c1_i32 = arith.constant 1 : i32
    %345 = vector.broadcast %c1_i32 : i32 to vector<16x128xi32>
    %346 = arith.cmpi eq, %323, %345 : vector<16x128xi32>
    %cst_126 = arith.constant 0.000000e+00 : f32
    %347 = vector.broadcast %cst_126 : f32 to vector<16x128xf32>
    %348 = arith.select %346, %341, %347 : vector<16x128xi1>, vector<16x128xf32>
    %349 = arith.addf %337, %348 : vector<16x128xf32>
    %c12_127 = arith.constant 12 : index
    %350 = arith.index_cast %c0_i32 : i32 to index
    %c0_128 = arith.constant 0 : index
    %c0_129 = arith.constant 0 : index
    %351 = vector.load %arg1[%c12_127, %350, %c0_128, %c0_129] : memref<21x1x16x128xbf16, #tpu.memory_space<vmem>>, vector<1x1x16x128xbf16>
    %352 = vector.shape_cast %351 : vector<1x1x16x128xbf16> to vector<16x128xbf16>
    %353 = arith.extf %352 : vector<16x128xbf16> to vector<16x128xf32>
    %354 = arith.subf %353, %318 : vector<16x128xf32>
    %355 = math.exp %354 : vector<16x128xf32>
    %356 = arith.addf %344, %355 : vector<16x128xf32>
    %c2_i32 = arith.constant 2 : i32
    %357 = vector.broadcast %c2_i32 : i32 to vector<16x128xi32>
    %358 = arith.cmpi eq, %323, %357 : vector<16x128xi32>
    %cst_130 = arith.constant 0.000000e+00 : f32
    %359 = vector.broadcast %cst_130 : f32 to vector<16x128xf32>
    %360 = arith.select %358, %353, %359 : vector<16x128xi1>, vector<16x128xf32>
    %361 = arith.addf %349, %360 : vector<16x128xf32>
    %c13_131 = arith.constant 13 : index
    %362 = arith.index_cast %c0_i32 : i32 to index
    %c0_132 = arith.constant 0 : index
    %c0_133 = arith.constant 0 : index
    %363 = vector.load %arg1[%c13_131, %362, %c0_132, %c0_133] : memref<21x1x16x128xbf16, #tpu.memory_space<vmem>>, vector<1x1x16x128xbf16>
    %364 = vector.shape_cast %363 : vector<1x1x16x128xbf16> to vector<16x128xbf16>
    %365 = arith.extf %364 : vector<16x128xbf16> to vector<16x128xf32>
    %366 = arith.subf %365, %318 : vector<16x128xf32>
    %367 = math.exp %366 : vector<16x128xf32>
    %368 = arith.addf %356, %367 : vector<16x128xf32>
    %c3_i32 = arith.constant 3 : i32
    %369 = vector.broadcast %c3_i32 : i32 to vector<16x128xi32>
    %370 = arith.cmpi eq, %323, %369 : vector<16x128xi32>
    %cst_134 = arith.constant 0.000000e+00 : f32
    %371 = vector.broadcast %cst_134 : f32 to vector<16x128xf32>
    %372 = arith.select %370, %365, %371 : vector<16x128xi1>, vector<16x128xf32>
    %373 = arith.addf %361, %372 : vector<16x128xf32>
    %c14_135 = arith.constant 14 : index
    %374 = arith.index_cast %c0_i32 : i32 to index
    %c0_136 = arith.constant 0 : index
    %c0_137 = arith.constant 0 : index
    %375 = vector.load %arg1[%c14_135, %374, %c0_136, %c0_137] : memref<21x1x16x128xbf16, #tpu.memory_space<vmem>>, vector<1x1x16x128xbf16>
    %376 = vector.shape_cast %375 : vector<1x1x16x128xbf16> to vector<16x128xbf16>
    %377 = arith.extf %376 : vector<16x128xbf16> to vector<16x128xf32>
    %378 = arith.subf %377, %318 : vector<16x128xf32>
    %379 = math.exp %378 : vector<16x128xf32>
    %380 = arith.addf %368, %379 : vector<16x128xf32>
    %c4_i32 = arith.constant 4 : i32
    %381 = vector.broadcast %c4_i32 : i32 to vector<16x128xi32>
    %382 = arith.cmpi eq, %323, %381 : vector<16x128xi32>
    %cst_138 = arith.constant 0.000000e+00 : f32
    %383 = vector.broadcast %cst_138 : f32 to vector<16x128xf32>
    %384 = arith.select %382, %377, %383 : vector<16x128xi1>, vector<16x128xf32>
    %385 = arith.addf %373, %384 : vector<16x128xf32>
    %c15_139 = arith.constant 15 : index
    %386 = arith.index_cast %c0_i32 : i32 to index
    %c0_140 = arith.constant 0 : index
    %c0_141 = arith.constant 0 : index
    %387 = vector.load %arg1[%c15_139, %386, %c0_140, %c0_141] : memref<21x1x16x128xbf16, #tpu.memory_space<vmem>>, vector<1x1x16x128xbf16>
    %388 = vector.shape_cast %387 : vector<1x1x16x128xbf16> to vector<16x128xbf16>
    %389 = arith.extf %388 : vector<16x128xbf16> to vector<16x128xf32>
    %390 = arith.subf %389, %318 : vector<16x128xf32>
    %391 = math.exp %390 : vector<16x128xf32>
    %392 = arith.addf %380, %391 : vector<16x128xf32>
    %c5_i32 = arith.constant 5 : i32
    %393 = vector.broadcast %c5_i32 : i32 to vector<16x128xi32>
    %394 = arith.cmpi eq, %323, %393 : vector<16x128xi32>
    %cst_142 = arith.constant 0.000000e+00 : f32
    %395 = vector.broadcast %cst_142 : f32 to vector<16x128xf32>
    %396 = arith.select %394, %389, %395 : vector<16x128xi1>, vector<16x128xf32>
    %397 = arith.addf %385, %396 : vector<16x128xf32>
    %c16_143 = arith.constant 16 : index
    %398 = arith.index_cast %c0_i32 : i32 to index
    %c0_144 = arith.constant 0 : index
    %c0_145 = arith.constant 0 : index
    %399 = vector.load %arg1[%c16_143, %398, %c0_144, %c0_145] : memref<21x1x16x128xbf16, #tpu.memory_space<vmem>>, vector<1x1x16x128xbf16>
    %400 = vector.shape_cast %399 : vector<1x1x16x128xbf16> to vector<16x128xbf16>
    %401 = arith.extf %400 : vector<16x128xbf16> to vector<16x128xf32>
    %402 = arith.subf %401, %318 : vector<16x128xf32>
    %403 = math.exp %402 : vector<16x128xf32>
    %404 = arith.addf %392, %403 : vector<16x128xf32>
    %c6_i32 = arith.constant 6 : i32
    %405 = vector.broadcast %c6_i32 : i32 to vector<16x128xi32>
    %406 = arith.cmpi eq, %323, %405 : vector<16x128xi32>
    %cst_146 = arith.constant 0.000000e+00 : f32
    %407 = vector.broadcast %cst_146 : f32 to vector<16x128xf32>
    %408 = arith.select %406, %401, %407 : vector<16x128xi1>, vector<16x128xf32>
    %409 = arith.addf %397, %408 : vector<16x128xf32>
    %c17_147 = arith.constant 17 : index
    %410 = arith.index_cast %c0_i32 : i32 to index
    %c0_148 = arith.constant 0 : index
    %c0_149 = arith.constant 0 : index
    %411 = vector.load %arg1[%c17_147, %410, %c0_148, %c0_149] : memref<21x1x16x128xbf16, #tpu.memory_space<vmem>>, vector<1x1x16x128xbf16>
    %412 = vector.shape_cast %411 : vector<1x1x16x128xbf16> to vector<16x128xbf16>
    %413 = arith.extf %412 : vector<16x128xbf16> to vector<16x128xf32>
    %414 = arith.subf %413, %318 : vector<16x128xf32>
    %415 = math.exp %414 : vector<16x128xf32>
    %416 = arith.addf %404, %415 : vector<16x128xf32>
    %c7_i32 = arith.constant 7 : i32
    %417 = vector.broadcast %c7_i32 : i32 to vector<16x128xi32>
    %418 = arith.cmpi eq, %323, %417 : vector<16x128xi32>
    %cst_150 = arith.constant 0.000000e+00 : f32
    %419 = vector.broadcast %cst_150 : f32 to vector<16x128xf32>
    %420 = arith.select %418, %413, %419 : vector<16x128xi1>, vector<16x128xf32>
    %421 = arith.addf %409, %420 : vector<16x128xf32>
    %c18_151 = arith.constant 18 : index
    %422 = arith.index_cast %c0_i32 : i32 to index
    %c0_152 = arith.constant 0 : index
    %c0_153 = arith.constant 0 : index
    %423 = vector.load %arg1[%c18_151, %422, %c0_152, %c0_153] : memref<21x1x16x128xbf16, #tpu.memory_space<vmem>>, vector<1x1x16x128xbf16>
    %424 = vector.shape_cast %423 : vector<1x1x16x128xbf16> to vector<16x128xbf16>
    %425 = arith.extf %424 : vector<16x128xbf16> to vector<16x128xf32>
    %426 = arith.subf %425, %318 : vector<16x128xf32>
    %427 = math.exp %426 : vector<16x128xf32>
    %428 = arith.addf %416, %427 : vector<16x128xf32>
    %c8_i32 = arith.constant 8 : i32
    %429 = vector.broadcast %c8_i32 : i32 to vector<16x128xi32>
    %430 = arith.cmpi eq, %323, %429 : vector<16x128xi32>
    %cst_154 = arith.constant 0.000000e+00 : f32
    %431 = vector.broadcast %cst_154 : f32 to vector<16x128xf32>
    %432 = arith.select %430, %425, %431 : vector<16x128xi1>, vector<16x128xf32>
    %433 = arith.addf %421, %432 : vector<16x128xf32>
    %c19_155 = arith.constant 19 : index
    %434 = arith.index_cast %c0_i32 : i32 to index
    %c0_156 = arith.constant 0 : index
    %c0_157 = arith.constant 0 : index
    %435 = vector.load %arg1[%c19_155, %434, %c0_156, %c0_157] : memref<21x1x16x128xbf16, #tpu.memory_space<vmem>>, vector<1x1x16x128xbf16>
    %436 = vector.shape_cast %435 : vector<1x1x16x128xbf16> to vector<16x128xbf16>
    %437 = arith.extf %436 : vector<16x128xbf16> to vector<16x128xf32>
    %438 = arith.subf %437, %318 : vector<16x128xf32>
    %439 = math.exp %438 : vector<16x128xf32>
    %440 = arith.addf %428, %439 : vector<16x128xf32>
    %c9_i32 = arith.constant 9 : i32
    %441 = vector.broadcast %c9_i32 : i32 to vector<16x128xi32>
    %442 = arith.cmpi eq, %323, %441 : vector<16x128xi32>
    %cst_158 = arith.constant 0.000000e+00 : f32
    %443 = vector.broadcast %cst_158 : f32 to vector<16x128xf32>
    %444 = arith.select %442, %437, %443 : vector<16x128xi1>, vector<16x128xf32>
    %445 = arith.addf %433, %444 : vector<16x128xf32>
    %c20_159 = arith.constant 20 : index
    %446 = arith.index_cast %c0_i32 : i32 to index
    %c0_160 = arith.constant 0 : index
    %c0_161 = arith.constant 0 : index
    %447 = vector.load %arg1[%c20_159, %446, %c0_160, %c0_161] : memref<21x1x16x128xbf16, #tpu.memory_space<vmem>>, vector<1x1x16x128xbf16>
    %448 = vector.shape_cast %447 : vector<1x1x16x128xbf16> to vector<16x128xbf16>
    %449 = arith.extf %448 : vector<16x128xbf16> to vector<16x128xf32>
    %450 = arith.subf %449, %318 : vector<16x128xf32>
    %451 = math.exp %450 : vector<16x128xf32>
    %452 = arith.addf %440, %451 : vector<16x128xf32>
    %c10_i32 = arith.constant 10 : i32
    %453 = vector.broadcast %c10_i32 : i32 to vector<16x128xi32>
    %454 = arith.cmpi eq, %323, %453 : vector<16x128xi32>
    %cst_162 = arith.constant 0.000000e+00 : f32
    %455 = vector.broadcast %cst_162 : f32 to vector<16x128xf32>
    %456 = arith.select %454, %449, %455 : vector<16x128xi1>, vector<16x128xf32>
    %457 = arith.addf %445, %456 : vector<16x128xf32>
    %458 = math.log %452 : vector<16x128xf32>
    %459 = arith.addf %318, %458 : vector<16x128xf32>
    %460 = arith.subf %459, %457 : vector<16x128xf32>
    %cst_163 = arith.constant 5.000000e+00 : f32
    %461 = vector.broadcast %cst_163 : f32 to vector<16x128xf32>
    %462 = arith.mulf %461, %264 : vector<16x128xf32>
    %cst_164 = arith.constant 2.000000e+00 : f32
    %463 = vector.broadcast %cst_164 : f32 to vector<16x128xf32>
    %464 = arith.mulf %463, %180 : vector<16x128xf32>
    %465 = arith.addf %462, %464 : vector<16x128xf32>
    %466 = arith.addf %465, %181 : vector<16x128xf32>
    %467 = arith.addf %466, %460 : vector<16x128xf32>
    %cst_165 = arith.constant 0.000000e+00 : f32
    %468 = vector.broadcast %cst_165 : f32 to vector<16x128xf32>
    %469 = arith.select %6, %467, %468 : vector<16x128xi1>, vector<16x128xf32>
    %cst_166 = arith.constant 5.000000e-01 : f32
    %470 = vector.broadcast %cst_166 : f32 to vector<16x128xf32>
    %471 = arith.mulf %470, %21 : vector<16x128xf32>
    %cst_167 = arith.constant 0.000000e+00 : f32
    %472 = vector.broadcast %cst_167 : f32 to vector<16x128xf32>
    %473 = arith.select %8, %471, %472 : vector<16x128xi1>, vector<16x128xf32>
    %474 = arith.addf %469, %473 : vector<16x128xf32>
    %475 = vector.extract_strided_slice %474 {offsets = [0, 0], sizes = [8, 128], strides = [1, 1]} : vector<16x128xf32> to vector<8x128xf32>
    %476 = arith.addf %0, %475 : vector<8x128xf32>
    %477 = vector.extract_strided_slice %474 {offsets = [8, 0], sizes = [8, 128], strides = [1, 1]} : vector<16x128xf32> to vector<8x128xf32>
    %478 = arith.addf %476, %477 : vector<8x128xf32>
    %c1_i32_168 = arith.constant 1 : i32
    %c0_169 = arith.constant 0 : index
    %c0_170 = arith.constant 0 : index
    %c0_171 = arith.constant 0 : index
    %479 = vector.load %arg3[%c0_169, %c0_170, %c0_171] : memref<1x8x128xf32, #tpu.memory_space<vmem>>, vector<1x8x128xf32>
    %480 = vector.shape_cast %479 : vector<1x8x128xf32> to vector<8x128xf32>
    %481 = vector.shape_cast %478 : vector<8x128xf32> to vector<1x8x128xf32>
    tpu.vector_store %arg3[%c0_169, %c0_170, %c0_171], %481 {strides = array<i32>} : memref<1x8x128xf32, #tpu.memory_space<vmem>>, vector<1x8x128xf32>,
    return
  }
  func.func @transform_0(%arg0: i32) -> (i32, i32, i32, i32) {
    %c0_i32 = arith.constant 0 : i32
    %c0_i32_0 = arith.constant 0 : i32
    %c0_i32_1 = arith.constant 0 : i32
    %c0_i32_2 = arith.constant 0 : i32
    return %c0_i32, %arg0, %c0_i32_0, %c0_i32_1 : i32, i32, i32, i32
  }
  func.func @transform_1(%arg0: i32) -> (i32, i32, i32, i32) {
    %c0_i32 = arith.constant 0 : i32
    %c0_i32_0 = arith.constant 0 : i32
    %c0_i32_1 = arith.constant 0 : i32
    %c0_i32_2 = arith.constant 0 : i32
    return %c0_i32, %arg0, %c0_i32_0, %c0_i32_1 : i32, i32, i32, i32
  }
  func.func @transform_2(%arg0: i32) -> (i32, i32, i32) {
    %c0_i32 = arith.constant 0 : i32
    %c0_i32_0 = arith.constant 0 : i32
    %c0_i32_1 = arith.constant 0 : i32
    return %arg0, %c0_i32, %c0_i32_0 : i32, i32, i32
  }
}

</mosaic_0001>

<bundles_post_ra>
// kernel: yolo_loss_pallas.1
= control target key start
LH: loop header
LB: loop body
LE: loop exit
PB: predicated region body
PF: predicated region fallthrough
CT: control target
= control target key end

     0   :  { %s2066_s1 = inlined_call_operand.vmem [shape: bf16[6,1,16,128], index: 1, kind: input, shape index: {}]   ;;  %s2067_s0 = inlined_call_operand.vmem [shape: bf16[21,1,16,128], index: 0, kind: input, shape index: {}]   ;;  %s2068_s2 = inlined_call_operand.vmem [shape: f32[1,8,128], index: 2, kind: output, shape index: {}]  }
   0x1   :  { %v734_v0 = vld [vmem:[%s2066_s1] sm:$0xff]   ;;  %v832_v1 = vld [vmem:[%s2066_s1 + $0x8] sm:$0xff]   ;;  %v833_v2 = vld [vmem:[%s2066_s1 + $0x10] sm:$0xff]  }
   0x2   :  { %v834_v3 = vld [vmem:[%s2066_s1 + $0x18] sm:$0xff]   ;;  %v750_v4 = vld [vmem:[%s2067_s0] sm:$0xff]   ;;  %v835_v5 = vld [vmem:[%s2067_s0 + $0x8] sm:$0xff]   ;;  %v975_v6 = vunpack.c.l.bf16 %v734_v0  ;;  %v977_v7 = vunpack.c.h.bf16 %v734_v0  ;;  %v979_v8 = vunpack.c.l.bf16 %v832_v1  ;;  %v981_v9 = vunpack.c.h.bf16 %v832_v1 }
   0x3   :  { %v836_v10 = vld [vmem:[%s2067_s0 + $0x10] sm:$0xff]   ;;  %v837_v11 = vld [vmem:[%s2067_s0 + $0x18] sm:$0xff]   ;;  %v989_v12 = vunpack.c.l.bf16 %v833_v2  ;;  %v991_v13 = vunpack.c.h.bf16 %v833_v2  ;;  %v993_v14 = vunpack.c.l.bf16 %v834_v3  ;;  %v995_v15 = vunpack.c.h.bf16 %v834_v3  ;;  %v838_v32 = vld [vmem:[%s2067_s0 + $0x28] sm:$0xff]  }
   0x4   :  { %v997_v16 = vunpack.c.l.bf16 %v750_v4  ;;  %v999_v17 = vunpack.c.h.bf16 %v750_v4  ;;  %v1001_v18 = vunpack.c.l.bf16 %v835_v5  ;;  %v1003_v19 = vunpack.c.h.bf16 %v835_v5  ;;  %v840_v33 = vld [vmem:[%s2067_s0 + $0x38] sm:$0xff]   ;;  %v839_v38 = vld [vmem:[%s2067_s0 + $0x30] sm:$0xff]   ;;  %v841_v39 = vld [vmem:[%s2067_s0 + $0x40] sm:$0xff]  }
   0x5   :  { %v1005_v20 = vunpack.c.l.bf16 %v836_v10  ;;  %v1007_v21 = vunpack.c.h.bf16 %v836_v10  ;;  %v1009_v22 = vunpack.c.l.bf16 %v837_v11  ;;  %v1011_v23 = vunpack.c.h.bf16 %v837_v11 }
   0x6   :  { %v1015_v24 = vadd.f32 %v989_v12, %v975_v6  ;;  %v1019_v25 = vadd.f32 %v991_v13, %v977_v7  ;;  %v1023_v26 = vadd.f32 %v993_v14, %v979_v8  ;;  %v1027_v27 = vadd.f32 %v995_v15, %v981_v9 }
   0x7   :  { %2087 = vst [vmem:[#allocation2_spill] sm:$0xff] %v1011_v23  ;;  %v1031_v28 = vadd.f32 %v1005_v20, %v997_v16  ;;  %v1035_v29 = vadd.f32 %v1007_v21, %v999_v17  ;;  %v1039_v30 = vadd.f32 %v1009_v22, %v1001_v18  ;;  %v1043_v31 = vadd.f32 %v1011_v23, %v1003_v19 }
   0x8   :  { %v132_v34 = vmax.f32 %v997_v16, %v975_v6  ;;  %v133_v35 = vmax.f32 %v999_v17, %v977_v7  ;;  %v134_v36 = vmax.f32 %v1001_v18, %v979_v8  ;;  %v135_v37 = vmax.f32 %v1003_v19, %v981_v9 }
   0x9   :  { %v136_v40 = vmin.f32 %v1031_v28, %v1015_v24  ;;  %v137_v41 = vmin.f32 %v1035_v29, %v1019_v25  ;;  %v140_v42 = vmin.f32 %v1039_v30, %v1023_v26  ;;  %v141_v43 = vmin.f32 %v1043_v31, %v1027_v27 }
   0xa   :  { %v1073_v44 = vunpack.c.l.bf16 %v838_v32  ;;  %v1075_v45 = vunpack.c.h.bf16 %v838_v32  ;;  %v1077_v46 = vunpack.c.l.bf16 %v840_v33  ;;  %v1079_v47 = vunpack.c.h.bf16 %v840_v33 }
   0xb   :  { %v1081_v48 = vunpack.c.l.bf16 %v839_v38  ;;  %v1083_v49 = vunpack.c.h.bf16 %v839_v38  ;;  %v1085_v50 = vunpack.c.l.bf16 %v841_v39  ;;  %v1087_v51 = vunpack.c.h.bf16 %v841_v39 }
   0xc   :  { %v1091_v52 = vmul.f32 %v993_v14, %v989_v12  ;;  %v1095_v53 = vmul.f32 %v995_v15, %v991_v13  ;;  %v1099_v54 = vmul.f32 %v1009_v22, %v1005_v20  ;;  %v1103_v55 = vmul.f32 %v1011_v23, %v1007_v21 }
   0xd   :  { %2088 = vst [vmem:[#allocation3_spill] sm:$0xff] %v1087_v51  ;;  %v138_v56 = vsub.f32 %v136_v40, %v132_v34  ;;  %v139_v57 = vsub.f32 %v137_v41, %v133_v35  ;;  %v142_v58 = vsub.f32 %v140_v42, %v134_v36  ;;  %v143_v59 = vsub.f32 %v141_v43, %v135_v37 }
   0xe   :  { %v1107_v60 = vadd.f32 %v1077_v46, %v1073_v44  ;;  %v1111_v61 = vadd.f32 %v1079_v47, %v1075_v45  ;;  %v1115_v62 = vadd.f32 %v1085_v50, %v1081_v48  ;;  %v1119_v63 = vadd.f32 %v1087_v51, %v1083_v49 }
   0xf   :  { %v146_v0 = vadd.f32 %v1099_v54, %v1091_v52  ;;  %v147_v1 = vadd.f32 %v1103_v55, %v1095_v53  ;;  %v1125_v2 = vmul.f32 %v142_v58, %v138_v56  ;;  %v1127_v3 = vmul.f32 %v143_v59, %v139_v57 }
  0x10   :  { %v236_v4 = vmax.f32 %v1073_v44, %v975_v6  ;;  %v238_v5 = vmax.f32 %v1081_v48, %v979_v8  ;;  %v237_v10 = vmax.f32 %v1075_v45, %v977_v7  ;;  %v239_v11 = vmax.f32 %v1083_v49, %v981_v9 }
  0x11   :  { %v240_v32 = vmin.f32 %v1107_v60, %v1015_v24  ;;  %v241_v33 = vmin.f32 %v1111_v61, %v1019_v25  ;;  %v1143_v34 = vmul.f32 %v1085_v50, %v1077_v46  ;;  %v244_v35 = vmin.f32 %v1115_v62, %v1023_v26 }
  0x12   :  { %v245_v36 = vmin.f32 %v1119_v63, %v1027_v27  ;;  %vm90_vm0 = vcmp.le.f32.partialorder %v975_v6, %v997_v16  ;;  %vm92_vm1 = vcmp.le.f32.partialorder %v979_v8, %v1001_v18  ;;  %vm104_vm2 = vcmp.le.f32.partialorder %v997_v16, %v975_v6 }
  0x13   :  { %v242_v37 = vsub.f32 %v240_v32, %v236_v4  ;;  %vm106_vm3 = vcmp.le.f32.partialorder %v1001_v18, %v979_v8  ;;  %v148_v38 = vsub.f32 %v146_v0, %v1125_v2  ;;  %v246_v39 = vsub.f32 %v244_v35, %v238_v5  ;;  %vm94_vm6 = vmand %vm90_vm0, %vm92_vm1  ;;  %v829_v32 = vld [vmem:[%s2066_s1 + $0x20] sm:$0xff]   ;;  %v845_v5 = vld [vmem:[%s2067_s0 + $0x68] sm:$0xff]  }
  0x14   :  { %v149_v40 = vsub.f32 %v147_v1, %v1127_v3  ;;  %v1161_v41 = vmul.f32 %v1087_v51, %v1079_v47  ;;  %v243_v42 = vsub.f32 %v241_v33, %v237_v10  ;;  %v247_v43 = vsub.f32 %v245_v36, %v239_v11  ;;  %vm108_vm10 = vmand %vm104_vm2, %vm106_vm3 }
  0x15   :  { %vm91_vm4 = vcmp.le.f32.partialorder %v977_v7, %v999_v17  ;;  %vm93_vm5 = vcmp.le.f32.partialorder %v981_v9, %v1003_v19  ;;  %v1167_v56 = vmul.f32 %v246_v39, %v242_v37  ;;  %v250_v57 = vadd.f32 %v1143_v34, %v1091_v52 }
  0x16   :  { %vm96_vm7 = vcmp.ge.f32.partialorder %v1015_v24, %v1031_v28  ;;  %vm105_vm8 = vcmp.le.f32.partialorder %v999_v17, %v977_v7  ;;  %vm107_vm9 = vcmp.le.f32.partialorder %v1003_v19, %v981_v9  ;;  %vm110_vm11 = vcmp.ge.f32.partialorder %v1031_v28, %v1015_v24  ;;  %vm1190_vm13 = vmand %vm91_vm4, %vm93_vm5 }
  0x17   :  { %vm118_vm12 = vcmp.le.f32.partialorder %v1031_v28, %v975_v6  ;;  %858 = vrcp.f32 %v148_v38  ;;  %vm120_vm14 = vcmp.le.f32.partialorder %v1015_v24, %v997_v16  ;;  %v1196_v59 = vmul.f32 %v247_v43, %v243_v42  ;;  %vm1200_vm15 = vmand %vm94_vm6, %vm96_vm7  ;;  %v842_v28 = vld [vmem:[%s2067_s0 + $0x50] sm:$0xff]  }
  0x18   :  { %860 = vrcp.f32 %v149_v40  ;;  %v251_v0 = vadd.f32 %v1161_v41, %v1095_v53  ;;  %vm109_vm0 = vmand %vm105_vm8, %vm107_vm9  ;;  %vm111_vm1 = vcmp.ge.f32.partialorder %v1035_v29, %v1019_v25  ;;  %v252_v4 = vsub.f32 %v250_v57, %v1167_v56  ;;  %v830_v40 = vld [vmem:[%s2067_s0 + $0x20] sm:$0xff]   ;;  %v831_v57 = vld [vmem:[%s2067_s0 + $0x48] sm:$0xff]  }
  0x19   :  { %vm1207_vm2 = vmand %vm108_vm10, %vm110_vm11  ;;  %vm119_vm3 = vcmp.le.f32.partialorder %v1035_v29, %v977_v7  ;;  %vm121_vm4 = vcmp.le.f32.partialorder %v1019_v25, %v999_v17  ;;  %862 = vrcp.f32 %v1099_v54  ;;  %vm124_vm6 = vcmp.le.f32.partialorder %v1039_v30, %v979_v8 }
  0x1a   :  { %vm122_vm5 = vmor %vm118_vm12, %vm120_vm14  ;;  %864 = vrcp.f32 %v1103_v55  ;;  %vm97_vm7 = vcmp.ge.f32.partialorder %v1019_v25, %v1035_v29  ;;  %v253_v11 = vsub.f32 %v251_v0, %v1196_v59  ;;  %vm125_vm10 = vcmp.le.f32.partialorder %v1043_v31, %v981_v9 }
  0x1b   :  { %vm1224_vm8 = vmand %vm109_vm0, %vm111_vm1  ;;  %866 = vrcp.f32 %v1091_v52  ;;  %vm114_vm11 = vcmp.ge.f32.partialorder %v1039_v30, %v1023_v26  ;;  %vm115_vm12 = vcmp.ge.f32.partialorder %v1043_v31, %v1027_v27  ;;  %vm128_vm0 = vcmp.le.f32.partialorder %v1023_v26, %v1001_v18 }
  0x1c   :  { %vm123_vm9 = vmor %vm119_vm3, %vm121_vm4  ;;  %868 = vrcp.f32 %v252_v4  ;;  %vm194_vm3 = vcmp.le.f32.partialorder %v975_v6, %v1073_v44  ;;  %vm196_vm4 = vcmp.le.f32.partialorder %v979_v8, %v1081_v48  ;;  %v1318_v43 = vunpack.c.l.bf16 %v829_v32 }
  0x1d   :  { %vm1236_vm14 = vmor %vm122_vm5, %vm124_vm6  ;;  %870 = vrcp.f32 %v1095_v53  ;;  %v1337_v4 = vunpack.c.h.bf16 %v829_v32  ;;  %vm2121_vm5 = vcmp.le.f32.partialorder %v1073_v44, %v975_v6  ;;  %v1408_v29 = vunpack.c.l.bf16 %v831_v57 }
  0x1e   :  { %vm1245_vm1 = vmand %vm1190_vm13, %vm97_vm7  ;;  %872 = vrcp.f32 %v1143_v34  ;;  %vm129_vm13 = vcmp.le.f32.partialorder %v1027_v27, %v1003_v19  ;;  %2111 = vst [vmem:[#allocation4_spill] sm:$0xff] %v1318_v43 }
  0x1f   :  { %vm1259_vm6 = vmor %vm123_vm9, %vm125_vm10  ;;  %874 = vrcp.f32 %v253_v11  ;;  %2114 = vst [vmem:[#allocation5_spill] sm:$0xff] %v1337_v4  ;;  %v1372_v11 = vunpack.c.l.bf16 %v830_v40  ;;  %v2128_v4 = vmov 0 }
  0x20   :  { %vm1270_vm7 = vmand %vm1207_vm2, %vm114_vm11  ;;  %vm195_vm2 = vcmp.le.f32.partialorder %v977_v7, %v1075_v45  ;;  %vm197_vm11 = vcmp.le.f32.partialorder %v981_v9, %v1083_v49  ;;  %876 = vrcp.f32 %v1161_v41 }
  0x21   :  { %v859_v35 = vpop.eup %858  ;;  %vm1279_vm9 = vmand %vm1224_vm8, %vm115_vm12  ;;  %vm101_vm12 = vcmp.ge.f32.partialorder %v1027_v27, %v1043_v31  ;;  %vm2115_vm8 = vcmp.ge.f32.partialorder %v1023_v26, %v1039_v30  ;;  %2124 = vst [vmem:[#allocation6_spill] sm:$0xff] %v1372_v11  ;;  %v291_v30 = vmax.f32 %v977_v7, 0.0 }
  0x22   :  { %vm1285_vm10 = vmor %vm1236_vm14, %vm128_vm0  ;;  %v861_v39 = vpop.eup %860  ;;  %v152_v32 = vmul.f32 %v859_v35, %v1125_v2  ;;  %v1410_v35 = vunpack.c.h.bf16 %v831_v57  ;;  %v1616_v57 = vunpack.c.l.bf16 %v845_v5 }
  0x23   :  { %vm1308_vm14 = vmand %vm194_vm3, %vm196_vm4  ;;  %v863_v0 = vpop.eup %862  ;;  %vm2120_vm4 = vcmp.le.f32.partialorder %v1081_v48, %v979_v8  ;;  %v153_v33 = vmul.f32 %v861_v39, %v1127_v3  ;;  %v1406_v3 = vunpack.c.h.bf16 %v830_v40  ;;  %v1426_v40 = vsub.f32 %v1372_v11, %v1318_v43 }
  0x24   :  { %vm1328_vm3 = vmor %vm1259_vm6, %vm129_vm13  ;;  %v865_v1 = vpop.eup %864  ;;  %2135 = vst [vmem:[#allocation8_spill] sm:$0xff] %v1410_v35  ;;  %v160_v43 = vmul.f32 %v863_v0, %v1091_v52 }
  0x25   :  { %vm1344_vm6 = vmand %vm1200_vm15, %vm2115_vm8  ;;  %v867_v2 = vpop.eup %866  ;;  %2134 = vst [vmem:[#allocation7_spill] sm:$0xff] %v1406_v3  ;;  %v161_v23 = vmul.f32 %v865_v1, %v1095_v53  ;;  %vm2145_vm8 = vcmp.le.f32.partialorder %v1115_v62, %v979_v8  ;;  %v162_v1 = vsel %vm1285_vm10, 0.0, %v152_v32  ;;  %v163_v35 = vsel %vm1328_vm3, 0.0, %v153_v33 }
  0x26   :  { %vm1354_vm13 = vmand %vm195_vm2, %vm197_vm11  ;;  %v869_v42 = vpop.eup %868  ;;  %2140 = vst [vmem:[#allocation9_spill] sm:$0xff] %v1426_v40  ;;  %v156_v0 = vmul.f32 %v867_v2, %v1099_v54  ;;  %v328_v54 = vmax.f32 %v989_v12, 0.0  ;;  %vm218_vm10 = vcmp.ge.f32.partialorder %v1115_v62, %v1023_v26  ;;  %vm219_vm3 = vcmp.ge.f32.partialorder %v1119_v63, %v1027_v27 }
  0x27   :  { %vm1364_vm15 = vmand %vm2121_vm5, %vm2120_vm4  ;;  %vm2127_vm5 = vcmp.ge.f32.partialorder %v1015_v24, %v1107_v60  ;;  %vm2130_vm4 = vcmp.le.f32.partialorder %v1015_v24, %v1073_v44  ;;  %v871_v40 = vpop.eup %870  ;;  %v290_v12 = vmax.f32 %v975_v6, 0.0  ;;  %v302_v32 = vmax.f32 %v979_v8, 0.0 }
  0x28   :  { %vm1379_vm2 = vmand %vm1245_vm1, %vm101_vm12  ;;  %vm2131_vm1 = vcmp.le.f32.partialorder %v1107_v60, %v975_v6  ;;  %v873_v3 = vpop.eup %872  ;;  %v157_v38 = vmul.f32 %v871_v40, %v1103_v55  ;;  %v164_v6 = vsel %vm1270_vm7, %v160_v43, %v162_v1  ;;  %v165_v55 = vsel %vm1279_vm9, %v161_v23, %v163_v35 }
  0x29   :  { %vm1390_vm11 = vmand %vm1308_vm14, %vm2127_vm5  ;;  %vm2136_vm14 = vcmp.le.f32.partialorder %v1083_v49, %v981_v9  ;;  %vm2137_vm5 = vcmp.le.f32.partialorder %v1075_v45, %v977_v7  ;;  %v875_v11 = vpop.eup %874  ;;  %v262_v37 = vmul.f32 %v873_v3, %v1091_v52  ;;  %v1531_v43 = vmin.f32 %v328_v54, 1.0 }
  0x2a   :  { %v2129_v4 = vsel %vm1390_vm11, 4294967295, %v2128_v4  ;;  %vm1400_vm12 = vmor %vm2131_vm1, %vm2130_vm4  ;;  %vm229_vm1 = vcmp.le.f32.partialorder %v1119_v63, %v981_v9  ;;  %v257_v36 = vmul.f32 %v875_v11, %v1196_v59  ;;  %v368_v8 = vmax.f32 %v993_v14, 0.0 }
  0x2b   :  { %vm1418_vm4 = vmand %vm2137_vm5, %vm2136_vm14  ;;  %vm2141_vm14 = vcmp.le.f32.partialorder %v1019_v25, %v1075_v45  ;;  %vm2142_vm5 = vcmp.le.f32.partialorder %v1111_v61, %v977_v7  ;;  %v303_v7 = vmax.f32 %v981_v9, 0.0  ;;  %v258_v33 = vmul.f32 %v867_v2, %v1143_v34 }
  0x2c   :  { %vm1438_vm11 = vmor %vm2142_vm5, %vm2141_vm14  ;;  %vm232_vm5 = vcmp.le.f32.partialorder %v1023_v26, %v1081_v48  ;;  %v259_v35 = vmul.f32 %v871_v40, %v1161_v41  ;;  %v1547_v59 = vmin.f32 %v290_v12, 1.0  ;;  %v1551_v14 = vsel %vm1344_vm6, %v156_v0, %v164_v6  ;;  %v844_v40 = vld [vmem:[%s2067_s0 + $0x60] sm:$0xff]  }
  0x2d   :  { %vm1453_vm14 = vmor %vm1400_vm12, %vm2145_vm8  ;;  %vm2148_vm8 = vcmp.ge.f32.partialorder %v1107_v60, %v1015_v24  ;;  %v256_v60 = vmul.f32 %v869_v42, %v1167_v56  ;;  %v329_v56 = vmax.f32 %v991_v13, 0.0  ;;  %v877_v13 = vpop.eup %876  ;;  %v1562_v34 = vmin.f32 %v291_v30, 1.0  ;;  %v843_v42 = vld [vmem:[%s2067_s0 + $0x58] sm:$0xff]   ;;  %v848_v12 = vld [vmem:[%s2067_s0 + $0x80] sm:$0xff]  }
  0x2e   :  { %vm1471_vm12 = vmand %vm1364_vm15, %vm2148_vm8  ;;  %vm233_vm15 = vcmp.le.f32.partialorder %v1027_v27, %v1083_v49  ;;  %v369_v2 = vmax.f32 %v995_v15, 0.0  ;;  %vm2166_vm6 = vcmp.ge.f32.partialorder %v1023_v26, %v1115_v62  ;;  %v263_v15 = vmul.f32 %v877_v13, %v1095_v53  ;;  %v847_v13 = vld [vmem:[%s2067_s0 + $0x78] sm:$0xff]  }
  0x2f   :  { %vm1485_vm0 = vmor %vm1438_vm11, %vm229_vm1  ;;  %vm2155_vm11 = vcmp.ge.f32.partialorder %v1111_v61, %v1019_v25  ;;  %v1564_v41 = vmin.f32 %v329_v56, 1.0  ;;  %v1587_v3 = vmin.f32 %v302_v32, 1.0  ;;  %v1589_v39 = vmin.f32 %v303_v7, 1.0  ;;  %v851_v26 = vld [vmem:[%s2067_s0 + $0x98] sm:$0xff]  }
  0x30   :  { %vm1499_vm8 = vmor %vm1453_vm14, %vm232_vm5  ;;  %878 = vrsqrt.f32 %v1531_v43  ;;  %v1618_v0 = vunpack.c.h.bf16 %v845_v5  ;;  %v1625_v54 = vmin.f32 %v369_v2, 1.0  ;;  %v1627_v24 = vunpack.c.l.bf16 %v842_v28 }
  0x31   :  { %vm1514_vm1 = vmand %vm1418_vm4, %vm2155_vm11  ;;  %v264_v52 = vsel %vm1499_vm8, 0.0, %v256_v60  ;;  %vm2162_vm4 = vcmp.ge.f32.partialorder %v1019_v25, %v1111_v61  ;;  %v846_v25 = vld [vmem:[%s2067_s0 + $0x70] sm:$0xff]   ;;  %v1575_v61 = vsel %vm1379_vm2, %v157_v38, %v165_v55  ;;  %880 = vrsqrt.f32 %v1564_v41 }
  0x32   :  { %vm1525_vm7 = vmand %vm1471_vm12, %vm218_vm10  ;;  %2165 = vst [vmem:[#allocation10_spill] sm:$0xff] %v1575_v61  ;;  %v1620_v1 = vunpack.c.l.bf16 %v846_v25  ;;  %v1622_v31 = vunpack.c.h.bf16 %v846_v25  ;;  %v1629_v60 = vunpack.c.h.bf16 %v842_v28  ;;  %vm2172_vm5 = vcmp.ge.f32.partialorder %v1027_v27, %v1119_v63  ;;  %v849_v27 = vld [vmem:[%s2067_s0 + $0x88] sm:$0xff]  }
  0x33   :  { %vm1539_vm9 = vmor %vm1485_vm0, %vm233_vm15  ;;  %v266_v62 = vsel %vm1525_vm7, %v262_v37, %v264_v52  ;;  %v1649_v56 = vunpack.c.l.bf16 %v843_v42  ;;  %v1651_v6 = vunpack.c.h.bf16 %v843_v42  ;;  %v1658_v55 = vunpack.c.l.bf16 %v844_v40  ;;  %v850_v37 = vld [vmem:[%s2067_s0 + $0x90] sm:$0xff]  }
  0x34   :  { %vm1558_vm0 = vmand %vm1354_vm13, %vm2162_vm4  ;;  %vm2167_vm13 = vnez %v2129_v4  ;;  %v265_v53 = vsel %vm1539_vm9, 0.0, %v257_v36  ;;  %v1608_v4 = vmin.f32 %v368_v8, 1.0  ;;  %v1660_v51 = vunpack.c.h.bf16 %v844_v40 }
  0x35   :  { %vm1582_vm14 = vmand %vm2167_vm13, %vm2166_vm6  ;;  %v429_v32 = vmax.f32 %v1616_v57, %v1620_v1  ;;  %v430_v7 = vmax.f32 %v1618_v0, %v1622_v31  ;;  %v1669_v23 = vunpack.c.l.bf16 %v848_v12  ;;  %v1671_v36 = vunpack.c.h.bf16 %v848_v12  ;;  %v852_v12 = vld [vmem:[%s2067_s0 + $0xa0] sm:$0xff]  }
  0x36   :  { %vm1599_vm2 = vmand %vm1514_vm1, %vm219_vm3  ;;  %v1647_v30 = vsel %vm1582_vm14, %v258_v33, %v266_v62  ;;  %882 = vrsqrt.f32 %v1608_v4  ;;  %vm334_vm3 = vcmp.eq.f32.partialorder %v1531_v43, inf  ;;  %v1687_v33 = vunpack.c.l.bf16 %v849_v27 }
  0x37   :  { %vm1639_vm12 = vmand %vm1558_vm0, %vm2172_vm5  ;;  %v267_v58 = vsel %vm1599_vm2, %v263_v15, %v265_v53  ;;  %vm1682_vm10 = vcmp.ge.f32.partialorder %v1551_v14, %v1647_v30  ;;  %v1689_v52 = vunpack.c.h.bf16 %v849_v27  ;;  %v413_v5 = vmax.f32 %v1629_v60, %v1651_v6 }
  0x38   :  { %v1678_v8 = vsel %vm1639_vm12, %v259_v35, %v267_v58  ;;  %2178 = vst [vmem:[#allocation12_spill] sm:$0xff] %v1687_v33  ;;  %v412_v35 = vmax.f32 %v1627_v24, %v1649_v56  ;;  %v1697_v25 = vunpack.c.l.bf16 %v847_v13  ;;  %v1699_v10 = vunpack.c.h.bf16 %v847_v13 }
  0x39   :  { %2175 = vst [vmem:[#allocation11_spill] sm:$0xff] %v1678_v8  ;;  %v1701_v15 = vunpack.c.l.bf16 %v850_v37  ;;  %v1703_v28 = vunpack.c.h.bf16 %v850_v37  ;;  %vm1710_vm15 = vcmp.ge.f32.partialorder %v1575_v61, %v1678_v8  ;;  %v2179_v53 = vmov 0 }
  0x3a   :  { %v2180_v53 = vsel %vm1710_vm15, 4294967295, %v2179_v53  ;;  %v308_v62 = vsel %vm1682_vm10, %v1005_v20, %v1077_v46  ;;  %v431_v42 = vmax.f32 %v1658_v55, %v429_v32  ;;  %v432_v40 = vmax.f32 %v1660_v51, %v430_v7  ;;  %v879_v38 = vpop.eup %878 }
  0x3b   :  { %2181 = vst [vmem:[#allocation13_spill] sm:$0xff] %v2180_v53  ;;  %v284_v58 = vsel %vm1682_vm10, %v997_v16, %v1073_v44  ;;  %v285_v27 = vsel %vm1710_vm15, %v999_v17, %v1075_v45  ;;  %v450_v20 = vmax.f32 %v1669_v23, %v1687_v33  ;;  %v451_v46 = vmax.f32 %v1671_v36, %v1689_v52  ;;  %v881_v45 = vpop.eup %880 }
  0x3c   :  { %v296_v32 = vsel %vm1682_vm10, %v1001_v18, %v1081_v48  ;;  %v297_v16 = vsel %vm1710_vm15, %v1003_v19, %v1083_v49  ;;  %vm336_vm8 = vcmp.eq.f32.partialorder %v1531_v43, 0.0  ;;  %vm341_vm11 = vcmp.eq.f32.partialorder %v1564_v41, inf }
  0x3d   :  { %v1745_v17 = vunpack.c.l.bf16 %v851_v26  ;;  %v1747_v44 = vunpack.c.h.bf16 %v851_v26  ;;  %v309_v7 = vsel %vm1710_vm15, %v1007_v21, %v1079_v47  ;;  %v310_v18 = vmax.f32 %v308_v62, 0.0 }
  0x3e   :  { %v1753_v48 = vunpack.c.l.bf16 %v852_v12  ;;  %v1755_v13 = vunpack.c.h.bf16 %v852_v12  ;;  %v286_v19 = vmax.f32 %v284_v58, 0.0  ;;  %v333_v49 = vmul.f32 %v879_v38, %v1531_v43 }
  0x3f   :  { %884 = vrsqrt.f32 %v1625_v54  ;;  %v433_v37 = vmax.f32 %v412_v35, %v431_v42  ;;  %vm343_vm1 = vcmp.eq.f32.partialorder %v1564_v41, 0.0  ;;  %v452_v26 = vmax.f32 %v1697_v25, %v450_v20 }
  0x40   :  { %2182 = vst [vmem:[#allocation14_spill] sm:$0xff] %v1753_v48  ;;  %2183 = vst [vmem:[#allocation15_spill] sm:$0xff] %v1755_v13  ;;  %v883_v2 = vpop.eup %882  ;;  %v453_v11 = vmax.f32 %v1699_v10, %v451_v46  ;;  %v469_v21 = vmax.f32 %v1745_v17, %v1753_v48  ;;  %v470_v47 = vmax.f32 %v1747_v44, %v1755_v13  ;;  %v287_v62 = vmax.f32 %v285_v27, 0.0 }
  0x41   :  { %v298_v12 = vmax.f32 %v296_v32, 0.0  ;;  %v299_v58 = vmax.f32 %v297_v16, 0.0  ;;  %v311_v38 = vmax.f32 %v309_v7, 0.0  ;;  %vm374_vm7 = vcmp.eq.f32.partialorder %v1608_v4, inf }
  0x42   :  { %v1767_v35 = vmin.f32 %v310_v18, 1.0  ;;  %v434_v42 = vmax.f32 %v413_v5, %v432_v40  ;;  %v471_v63 = vmax.f32 %v1701_v15, %v469_v21  ;;  %v472_v20 = vmax.f32 %v1703_v28, %v470_v47 }
  0x43   :  { %v288_v46 = vmin.f32 %v286_v19, 1.0  ;;  %v335_v48 = vsel %vm334_vm3, %v1531_v43, %v333_v49  ;;  %v340_v13 = vmul.f32 %v881_v45, %v1564_v41  ;;  %v373_v5 = vmul.f32 %v883_v2, %v1608_v4 }
  0x44   :  { %v473_v40 = vmax.f32 %v452_v26, %v471_v63  ;;  %v474_v16 = vmax.f32 %v453_v11, %v472_v20  ;;  %v289_v7 = vmin.f32 %v287_v62, 1.0  ;;  %v300_v18 = vmin.f32 %v298_v12, 1.0  ;;  %v2184_v11 = vld [vmem:[#allocation6_spill] sm:$0xff]  ;;  %v2186_v62 = vld [vmem:[#allocation7_spill] sm:$0xff] }
  0x45   :  { %v301_v19 = vmin.f32 %v299_v58, 1.0  ;;  %v1781_v21 = vmin.f32 %v311_v38, 1.0  ;;  %vm376_vm9 = vcmp.eq.f32.partialorder %v1608_v4, 0.0  ;;  %886 = vrsqrt.f32 %v1767_v35 }
  0x46   :  { %v348_v45 = vsel %vm1682_vm10, %v1009_v22, %v1085_v50  ;;  %v1789_v49 = vmax.f32 %v433_v37, %v473_v40  ;;  %v1791_v47 = vmax.f32 %v434_v42, %v474_v16  ;;  %v294_v22 = vsub.f32 %v288_v46, %v1547_v59 }
  0x47   :  { %v2187_v50 = vand.u32 2147483648, %v1531_v43  ;;  %v342_v58 = vsel %vm341_vm11, %v1564_v41, %v340_v13  ;;  %v1820_v40 = vsub.f32 %v289_v7, %v1562_v34  ;;  %v306_v59 = vsub.f32 %v300_v18, %v1587_v3  ;;  %v853_v43 = vld [vmem:[%s2066_s1 + $0x28] sm:$0xff]  }
  0x48   :  { %v484_v38 = vsub.f32 %v1627_v24, %v1789_v49  ;;  %v485_v42 = vsub.f32 %v1629_v60, %v1791_v47  ;;  %v350_v46 = vmax.f32 %v348_v45, 0.0  ;;  %vm381_vm4 = vcmp.eq.f32.partialorder %v1625_v54, inf  ;;  %v2189_v18 = vld [vmem:[#allocation3_spill] sm:$0xff]  ;;  %v2190_v45 = vld [vmem:[#allocation2_spill] sm:$0xff] }
  0x49   :  { %v1810_v37 = vsel %vm336_vm8, %v2187_v50, %v335_v48  ;;  %v885_v20 = vpop.eup %884  ;;  %v498_v48 = vsub.f32 %v1649_v56, %v1789_v49  ;;  %v1830_v13 = vsub.f32 %v301_v19, %v1589_v39  ;;  %888 = vrsqrt.f32 %v1781_v21 }
  0x4a   :  { %v486_v16 = vmul.f32 1.442695, %v484_v38  ;;  %v488_v34 = vmul.f32 1.442695, %v485_v42  ;;  %v2188_v7 = vand.u32 2147483648, %v1564_v41  ;;  %v349_v50 = vsel %vm1710_vm15, %v2190_v45, %v2189_v18 }
  0x4b   :  { %v499_v12 = vsub.f32 %v1651_v6, %v1791_v47  ;;  %v500_v39 = vmul.f32 1.442695, %v498_v48  ;;  %vm316_vm0 = vcmp.eq.f32.partialorder %v1767_v35, inf  ;;  %v375_v19 = vsel %vm374_vm7, %v1608_v4, %v373_v5 }
  0x4c   :  { %v1837_v3 = vsel %vm343_vm1, %v2188_v7, %v342_v58  ;;  %v827_v38 = vunpack.c.l.bf16 %v853_v43  ;;  %890 = vpow2.f32 %v486_v16  ;;  %v1849_v41 = vmin.f32 %v350_v46, 1.0 }
  0x4d   :  { %v828_v58 = vunpack.c.h.bf16 %v853_v43  ;;  %892 = vpow2.f32 %v488_v34  ;;  %v502_v42 = vmul.f32 1.442695, %v499_v12  ;;  %v319_v7 = vand.u32 2147483648, %v1767_v35 }
  0x4e   :  { %v351_v18 = vmax.f32 %v349_v50, 0.0  ;;  %894 = vpow2.f32 %v500_v39  ;;  %v512_v48 = vsub.f32 %v1658_v55, %v1789_v49  ;;  %vm318_vm6 = vcmp.eq.f32.partialorder %v1767_v35, 0.0 }
  0x4f   :  { %v380_v5 = vmul.f32 %v885_v20, %v1625_v54  ;;  %896 = vpow2.f32 %v502_v42  ;;  %v513_v46 = vsub.f32 %v1660_v51, %v1791_v47  ;;  %v887_v43 = vpop.eup %886  ;;  %v2191_v12 = vand.u32 2147483648, %v1608_v4 }
  0x50   :  { %v854_v34 = vtrunc.f32 %v827_v38  ;;  %v514_v50 = vmul.f32 1.442695, %v512_v48  ;;  %v526_v39 = vsub.f32 %v1616_v57, %v1789_v49  ;;  %vm323_vm13 = vcmp.eq.f32.partialorder %v1781_v21, inf }
  0x51   :  { %v1863_v16 = vsel %vm376_vm9, %v2191_v12, %v375_v19  ;;  %898 = vrsqrt.f32 %v1849_v41  ;;  %v856_v20 = vtrunc.f32 %v828_v58  ;;  %v516_v42 = vmul.f32 1.442695, %v513_v46 }
  0x52   :  { %v527_v63 = vsub.f32 %v1618_v0, %v1791_v47  ;;  %v1871_v2 = vmin.f32 %v351_v18, 1.0  ;;  %v1873_v32 = vmul.f32 %v294_v22, %v294_v22  ;;  %900 = vpow2.f32 %v514_v50 }
  0x53   :  { %v528_v4 = vmul.f32 1.442695, %v526_v39  ;;  %v315_v19 = vmul.f32 %v887_v43, %v1767_v35  ;;  %v1876_v38 = vmul.f32 %v306_v59, %v306_v59  ;;  %902 = vpow2.f32 %v516_v42  ;;  %v889_v12 = vpop.eup %888 }
  0x54   :  { %v530_v48 = vmul.f32 1.442695, %v527_v63  ;;  %v1881_v58 = vsel %vm381_vm4, %v1625_v54, %v380_v5  ;;  %v1883_v46 = vcvt.f32.s32 %v854_v34  ;;  %v540_v22 = vsub.f32 %v1620_v1, %v1789_v49 }
  0x55   :  { %904 = vpow2.f32 %v528_v4  ;;  %v1888_v50 = vcvt.f32.s32 %v856_v20  ;;  %v541_v63 = vsub.f32 %v1622_v31, %v1791_v47  ;;  %vm325_vm14 = vcmp.eq.f32.partialorder %v1781_v21, 0.0 }
  0x56   :  { %906 = vpow2.f32 %v530_v48  ;;  %v891_v59 = vpop.eup %890  ;;  %v542_v43 = vmul.f32 1.442695, %v540_v22  ;;  %v554_v34 = vsub.f32 %v1697_v25, %v1789_v49  ;;  %v317_v20 = vsel %vm316_vm0, %v1767_v35, %v315_v19 }
  0x57   :  { %908 = vrsqrt.f32 %v1871_v2  ;;  %v893_v39 = vpop.eup %892  ;;  %v322_v42 = vmul.f32 %v889_v12, %v1781_v21  ;;  %v544_v4 = vmul.f32 1.442695, %v541_v63  ;;  %v555_v48 = vsub.f32 %v1699_v10, %v1791_v47 }
  0x58   :  { %v895_v27 = vpop.eup %894  ;;  %vm492_vm2 = vcmp.eq.s32.totalorder %v1883_v46, 0  ;;  %vm506_vm5 = vcmp.eq.s32.totalorder %v1883_v46, 1  ;;  %910 = vpow2.f32 %v542_v43  ;;  %v556_v22 = vmul.f32 1.442695, %v554_v34 }
  0x59   :  { %v897_v5 = vpop.eup %896  ;;  %vm493_vm12 = vcmp.eq.s32.totalorder %v1888_v50, 0  ;;  %v504_v18 = vadd.f32 %v895_v27, %v891_v59  ;;  %912 = vpow2.f32 %v544_v4  ;;  %v558_v45 = vmul.f32 1.442695, %v555_v48 }
  0x5a   :  { %v1908_v19 = vsel %vm318_vm6, %v319_v7, %v317_v20  ;;  %v505_v12 = vadd.f32 %v897_v5, %v893_v39  ;;  %vm507_vm3 = vcmp.eq.s32.totalorder %v1888_v50, 1  ;;  %914 = vpow2.f32 %v556_v22 }
  0x5b   :  { %v899_v63 = vpop.eup %898  ;;  %v494_v26 = vsel %vm492_vm2, %v1627_v24, 0.0  ;;  %v508_v43 = vsel %vm506_vm5, %v1649_v56, 0.0  ;;  %916 = vpow2.f32 %v558_v45  ;;  %v568_v34 = vsub.f32 %v1669_v23, %v1789_v49 }
  0x5c   :  { %v901_v27 = vpop.eup %900  ;;  %v324_v35 = vsel %vm323_vm13, %v1781_v21, %v322_v42  ;;  %v495_v7 = vsel %vm493_vm12, %v1629_v60, 0.0  ;;  %v569_v59 = vsub.f32 %v1671_v36, %v1791_v47  ;;  %v582_v5 = vsub.f32 %v1687_v33, %v1789_v49 }
  0x5d   :  { %v903_v24 = vpop.eup %902  ;;  %v509_v56 = vsel %vm507_vm3, %v1651_v6, 0.0  ;;  %v518_v45 = vadd.f32 %v901_v27, %v504_v18  ;;  %vm520_vm8 = vcmp.eq.s32.totalorder %v1883_v46, 2  ;;  %v570_v39 = vmul.f32 1.442695, %v568_v34 }
  0x5e   :  { %v510_v4 = vadd.f32 %v508_v43, %v494_v26  ;;  %v519_v48 = vadd.f32 %v903_v24, %v505_v12  ;;  %vm521_vm11 = vcmp.eq.s32.totalorder %v1888_v50, 2  ;;  %v572_v42 = vmul.f32 1.442695, %v569_v59 }
  0x5f   :  { %v905_v20 = vpop.eup %904  ;;  %918 = vpow2.f32 %v570_v39  ;;  %v583_v8 = vsub.f32 %v1689_v52, %v1791_v47  ;;  %v584_v33 = vmul.f32 1.442695, %v582_v5  ;;  %v511_v53 = vadd.f32 %v509_v56, %v495_v7 }
  0x60   :  { %v907_v60 = vpop.eup %906  ;;  %v532_v22 = vadd.f32 %v905_v20, %v518_v45  ;;  %v522_v6 = vsel %vm520_vm8, %v1658_v55, 0.0  ;;  %920 = vpow2.f32 %v572_v42  ;;  %v2192_v34 = vand.u32 2147483648, %v1781_v21 }
  0x61   :  { %v909_v61 = vpop.eup %908  ;;  %v533_v18 = vadd.f32 %v907_v60, %v519_v48  ;;  %vm356_vm1 = vcmp.eq.f32.partialorder %v1849_v41, inf  ;;  %vm363_vm7 = vcmp.eq.f32.partialorder %v1871_v2, inf  ;;  %v523_v12 = vsel %vm521_vm11, %v1660_v51, 0.0 }
  0x62   :  { %v1933_v26 = vsel %vm325_vm14, %v2192_v34, %v324_v35  ;;  %922 = vpow2.f32 %v584_v33  ;;  %v586_v43 = vmul.f32 1.442695, %v583_v8  ;;  %v911_v27 = vpop.eup %910  ;;  %vm534_vm9 = vcmp.eq.s32.totalorder %v1883_v46, 3 }
  0x63   :  { %vm535_vm4 = vcmp.eq.s32.totalorder %v1888_v50, 3  ;;  %v596_v55 = vsub.f32 %v1701_v15, %v1789_v49  ;;  %v597_v21 = vsub.f32 %v1703_v28, %v1791_v47  ;;  %v913_v35 = vpop.eup %912  ;;  %v355_v7 = vmul.f32 %v899_v63, %v1849_v41 }
  0x64   :  { %v524_v59 = vadd.f32 %v522_v6, %v510_v4  ;;  %v546_v5 = vadd.f32 %v911_v27, %v532_v22  ;;  %924 = vpow2.f32 %v586_v43  ;;  %v915_v51 = vpop.eup %914  ;;  %vm358_vm0 = vcmp.eq.f32.partialorder %v1849_v41, 0.0  ;;  %v2193_v6 = vld [vmem:[#allocation14_spill] sm:$0xff]  ;;  %v2194_v27 = vld [vmem:[#allocation15_spill] sm:$0xff] }
  0x65   :  { %v525_v8 = vadd.f32 %v523_v12, %v511_v53  ;;  %v547_v33 = vadd.f32 %v913_v35, %v533_v18  ;;  %v598_v24 = vmul.f32 1.442695, %v596_v55  ;;  %v600_v56 = vmul.f32 1.442695, %v597_v21  ;;  %v917_v45 = vpop.eup %916 }
  0x66   :  { %vm365_vm6 = vcmp.eq.f32.partialorder %v1871_v2, 0.0  ;;  %vm383_vm13 = vcmp.eq.f32.partialorder %v1625_v54, 0.0  ;;  %v536_v39 = vsel %vm534_vm9, %v1616_v57, 0.0  ;;  %v537_v63 = vsel %vm535_vm4, %v1618_v0, 0.0 }
  0x67   :  { %vm548_vm14 = vcmp.eq.s32.totalorder %v1883_v46, 4  ;;  %v610_v53 = vsub.f32 %v1745_v17, %v1789_v49  ;;  %vm549_vm2 = vcmp.eq.s32.totalorder %v1888_v50, 4  ;;  %v560_v20 = vadd.f32 %v915_v51, %v546_v5 }
  0x68   :  { %926 = vpow2.f32 %v598_v24  ;;  %v611_v4 = vsub.f32 %v1747_v44, %v1791_v47  ;;  %v362_v48 = vmul.f32 %v909_v61, %v1871_v2  ;;  %v561_v42 = vadd.f32 %v917_v45, %v547_v33 }
  0x69   :  { %928 = vpow2.f32 %v600_v56  ;;  %v612_v57 = vmul.f32 1.442695, %v610_v53  ;;  %v538_v60 = vadd.f32 %v536_v39, %v524_v59  ;;  %v539_v22 = vadd.f32 %v537_v63, %v525_v8  ;;  %v919_v34 = vpop.eup %918 }
  0x6a   :  { %v614_v0 = vmul.f32 1.442695, %v611_v4  ;;  %v624_v18 = vsub.f32 %v2193_v6, %v1789_v49  ;;  %v550_v12 = vsel %vm548_vm14, %v1620_v1, 0.0  ;;  %v551_v43 = vsel %vm549_vm2, %v1622_v31, 0.0  ;;  %v921_v21 = vpop.eup %920 }
  0x6b   :  { %930 = vpow2.f32 %v612_v57  ;;  %v625_v55 = vsub.f32 %v2194_v27, %v1791_v47  ;;  %vm562_vm5 = vcmp.eq.s32.totalorder %v1883_v46, 5  ;;  %v574_v61 = vadd.f32 %v919_v34, %v560_v20 }
  0x6c   :  { %932 = vpow2.f32 %v614_v0  ;;  %v626_v35 = vmul.f32 1.442695, %v624_v18  ;;  %v923_v59 = vpop.eup %922  ;;  %v346_v5 = vsub.f32 %v1908_v19, %v1810_v37  ;;  %vm563_vm12 = vcmp.eq.s32.totalorder %v1888_v50, 5 }
  0x6d   :  { %v575_v51 = vadd.f32 %v921_v21, %v561_v42  ;;  %v628_v1 = vmul.f32 1.442695, %v625_v55  ;;  %v357_v31 = vsel %vm356_vm1, %v1849_v41, %v355_v7  ;;  %v364_v8 = vsel %vm363_vm7, %v1871_v2, %v362_v48 }
  0x6e   :  { %v552_v33 = vadd.f32 %v550_v12, %v538_v60  ;;  %934 = vpow2.f32 %v626_v35  ;;  %v925_v24 = vpop.eup %924  ;;  %v553_v56 = vadd.f32 %v551_v43, %v539_v22  ;;  %v564_v45 = vsel %vm562_vm5, %v1697_v25, 0.0  ;;  %v2202_v35 = vld [vmem:[#allocation10_spill] sm:$0xff] }
  0x6f   :  { %v588_v39 = vadd.f32 %v923_v59, %v574_v61  ;;  %936 = vpow2.f32 %v628_v1  ;;  %v389_v37 = vmul.f32 %v1820_v40, %v1820_v40  ;;  %v565_v19 = vsel %vm563_vm12, %v1699_v10, 0.0  ;;  %v2203_v59 = vld [vmem:[#allocation11_spill] sm:$0xff] }
  0x70   :  { %vm576_vm3 = vcmp.eq.s32.totalorder %v1883_v46, 6  ;;  %v589_v7 = vadd.f32 %v925_v24, %v575_v51  ;;  %v347_v63 = vsub.f32 %v1933_v26, %v1837_v3  ;;  %v2195_v53 = vand.u32 2147483648, %v1849_v41  ;;  %v2205_v51 = vld [vmem:[#allocation8_spill] sm:$0xff] }
  0x71   :  { %v391_v25 = vmul.f32 %v1830_v13, %v1830_v13  ;;  %vm577_vm8 = vcmp.eq.s32.totalorder %v1888_v50, 6  ;;  %v2196_v40 = vand.u32 2147483648, %v1871_v2  ;;  %v2197_v48 = vand.u32 2147483648, %v1625_v54 }
  0x72   :  { %v360_v20 = vsel %vm358_vm0, %v2195_v53, %v357_v31  ;;  %v927_v4 = vpop.eup %926  ;;  %v392_v41 = vadd.f32 %v1876_v38, %v1873_v32  ;;  %v566_v26 = vadd.f32 %v564_v45, %v552_v33  ;;  %v394_v13 = vmul.f32 %v346_v5, %v346_v5  ;;  %v2198_v38 = vld [vmem:[#allocation5_spill] sm:$0xff]  ;;  %v2208_v53 = vld [vmem:[#allocation4_spill] sm:$0xff] }
  0x73   :  { %v367_v10 = vsel %vm365_vm6, %v2196_v40, %v364_v8  ;;  %v385_v3 = vsel %vm383_vm13, %v2197_v48, %v1881_v58  ;;  %v929_v42 = vpop.eup %928  ;;  %v567_v57 = vadd.f32 %v565_v19, %v553_v56  ;;  %v578_v60 = vsel %vm576_vm3, %v1669_v23, 0.0 }
  0x74   :  { %v602_v22 = vadd.f32 %v927_v4, %v588_v39  ;;  %v386_v0 = vsub.f32 %v360_v20, %v1863_v16  ;;  %v579_v2 = vsel %vm577_vm8, %v1671_v36, 0.0  ;;  %vm590_vm11 = vcmp.eq.s32.totalorder %v1883_v46, 7 }
  0x75   :  { %v603_v18 = vadd.f32 %v929_v42, %v589_v7  ;;  %v931_v34 = vpop.eup %930  ;;  %v387_v54 = vsub.f32 %v367_v10, %v385_v3  ;;  %v393_v58 = vadd.f32 %v391_v25, %v389_v37  ;;  %v395_v12 = vmul.f32 %v347_v63, %v347_v63 }
  0x76   :  { %vm591_vm1 = vcmp.eq.s32.totalorder %v1888_v50, 7  ;;  %v933_v32 = vpop.eup %932  ;;  %v26_v43 = vsub.f32 %v2186_v62, %v2198_v38  ;;  %v2199_v23 = vsel %vm1682_vm10, %v1551_v14, %v1647_v30  ;;  %v2200_v36 = vsel %vm1682_vm10, %v2184_v11, %v1408_v29  ;;  %v2207_v30 = vld [vmem:[#allocation12_spill] sm:$0xff] }
  0x77   :  { %v278_v16 = vsub.f32 %v2200_v36, %v2199_v23  ;;  %v580_v55 = vadd.f32 %v578_v60, %v566_v26  ;;  %v616_v21 = vadd.f32 %v931_v34, %v602_v22  ;;  %v2204_v5 = vsel %vm1710_vm15, %v2202_v35, %v2203_v59 }
  0x78   :  { %v2206_v1 = vsel %vm1710_vm15, %v2186_v62, %v2205_v51  ;;  %v581_v14 = vadd.f32 %v579_v2, %v567_v57  ;;  %v592_v8 = vsel %vm590_vm11, %v2207_v30, 0.0  ;;  %v617_v33 = vadd.f32 %v933_v32, %v603_v18  ;;  %v935_v24 = vpop.eup %934 }
  0x79   :  { %v279_v31 = vsub.f32 %v2206_v1, %v2204_v5  ;;  %v396_v56 = vadd.f32 %v394_v13, %v392_v41  ;;  %v398_v45 = vmul.f32 %v386_v0, %v386_v0  ;;  %v593_v39 = vsel %vm591_vm1, %v1689_v52, 0.0  ;;  %v937_v37 = vpop.eup %936  ;;  %v2209_v13 = vld [vmem:[#allocation9_spill] sm:$0xff] }
  0x7a   :  { %vm604_vm7 = vcmp.eq.s32.totalorder %v1883_v46, 8  ;;  %v397_v19 = vadd.f32 %v395_v12, %v393_v58  ;;  %v399_v7 = vmul.f32 %v387_v54, %v387_v54  ;;  %vm605_vm9 = vcmp.eq.s32.totalorder %v1888_v50, 8 }
  0x7b   :  { %v630_v63 = vadd.f32 %v935_v24, %v616_v21  ;;  %v32_v20 = vsub.f32 %v1408_v29, %v2208_v53  ;;  %v33_v25 = vsub.f32 %v2205_v51, %v2198_v38  ;;  %v594_v4 = vadd.f32 %v592_v8, %v580_v55 }
  0x7c   :  { %v631_v40 = vadd.f32 %v937_v37, %v617_v33  ;;  %v280_v10 = vmul.f32 %v278_v16, %v278_v16  ;;  %v595_v48 = vadd.f32 %v593_v39, %v581_v14  ;;  %v606_v52 = vsel %vm604_vm7, %v1701_v15, 0.0 }
  0x7d   :  { %938 = vlog2.f32 %v630_v63  ;;  %v400_v3 = vadd.f32 %v398_v45, %v396_v56  ;;  %v607_v41 = vsel %vm605_vm9, %v1703_v28, 0.0  ;;  %vm618_vm4 = vcmp.eq.s32.totalorder %v1883_v46, 9 }
  0x7e   :  { %940 = vlog2.f32 %v631_v40  ;;  %v281_v26 = vmul.f32 %v279_v31, %v279_v31  ;;  %v401_v42 = vadd.f32 %v399_v7, %v397_v19  ;;  %vm619_vm0 = vcmp.eq.s32.totalorder %v1888_v50, 9 }
  0x7f   :  { %v34_v57 = vmul.f32 %v2209_v13, %v2209_v13  ;;  %v35_v60 = vmul.f32 %v26_v43, %v26_v43  ;;  %v608_v22 = vadd.f32 %v606_v52, %v594_v4  ;;  %v36_v0 = vmul.f32 %v32_v20, %v32_v20 }
  0x80   :  { %v37_v2 = vmul.f32 %v33_v25, %v33_v25  ;;  %v609_v18 = vadd.f32 %v607_v41, %v595_v48  ;;  %v620_v15 = vsel %vm618_vm4, %v1745_v17, 0.0  ;;  %v621_v34 = vsel %vm619_vm0, %v1747_v44, 0.0 }
  0x81   :  { %vm632_vm6 = vcmp.eq.s32.totalorder %v1883_v46, 10  ;;  %v646_v28 = vmul.f32 5.0, %v400_v3  ;;  %v648_v54 = vmul.f32 2.0, %v280_v10  ;;  %v276_v58 = vsel %vm1682_vm10, %v1408_v29, %v2184_v11 }
  0x82   :  { %vm633_vm13 = vcmp.eq.s32.totalorder %v1888_v50, 10  ;;  %v647_v12 = vmul.f32 5.0, %v401_v42  ;;  %v649_v32 = vmul.f32 2.0, %v281_v26  ;;  %v277_v17 = vsel %vm1710_vm15, %v2205_v51, %v2186_v62 }
  0x83   :  { %v622_v43 = vadd.f32 %v620_v15, %v608_v22  ;;  %v623_v44 = vadd.f32 %v621_v34, %v609_v18  ;;  %v634_v46 = vsel %vm632_vm6, %v2193_v6, 0.0  ;;  %v38_v23 = vadd.f32 %v36_v0, %v34_v57 }
  0x84   :  { %v282_v36 = vmul.f32 %v276_v58, %v276_v58  ;;  %v635_v16 = vsel %vm633_vm13, %v2194_v27, 0.0  ;;  %v650_v55 = vadd.f32 %v648_v54, %v646_v28  ;;  %v39_v29 = vadd.f32 %v37_v2, %v35_v60 }
  0x85   :  { %v283_v11 = vmul.f32 %v277_v17, %v277_v17  ;;  %v651_v50 = vadd.f32 %v649_v32, %v647_v12  ;;  %v636_v35 = vadd.f32 %v634_v46, %v622_v43  ;;  %v637_v5 = vadd.f32 %v635_v16, %v623_v44 }
  0x86   :  { %v652_v61 = vadd.f32 %v650_v55, %v282_v36  ;;  %v658_v51 = vmul.f32 0.5, %v38_v23  ;;  %vm18_vm10 = vcmp.eq.f32.partialorder %v2208_v53, 0.0  ;;  %v659_v27 = vmul.f32 0.5, %v39_v29 }
  0x87   :  { %v939_v9 = vpop.eup %938  ;;  %v653_v31 = vadd.f32 %v651_v50, %v283_v11  ;;  %vm19_vm15 = vcmp.eq.f32.partialorder %v2198_v38, 0.0  ;;  %vm16_vm14 = vcmp.gt.f32.partialorder %v2208_v53, 0.0  ;;  %vm17_vm2 = vcmp.gt.f32.partialorder %v2198_v38, 0.0 }
  0x88   :  { %v941_v21 = vpop.eup %940  ;;  %v639_v59 = vmul.f32 0.6931472, %v939_v9  ;;  %v660_v33 = vsel %vm18_vm10, %v658_v51, 0.0 }
  0x89   :  { %v641_v1 = vmul.f32 0.6931472, %v941_v21 }
  0x8a   :  { %v642_v62 = vadd.f32 %v639_v59, %v1789_v49  ;;  %v661_v49 = vsel %vm19_vm15, %v659_v27, 0.0 }
  0x8b   :  { %v643_v6 = vadd.f32 %v641_v1, %v1791_v47 }
  0x8c   :  { %v644_v14 = vsub.f32 %v642_v62, %v636_v35 }
  0x8d   :  { %v645_v30 = vsub.f32 %v643_v6, %v637_v5 }
  0x8e   :  { %v654_v8 = vadd.f32 %v652_v61, %v644_v14 }
  0x8f   :  { %v655_v24 = vadd.f32 %v653_v31, %v645_v30 }
  0x90   :  { %v656_v56 = vsel %vm16_vm14, %v654_v8, 0.0 }
  0x91   :  { %v657_v45 = vsel %vm17_vm2, %v655_v24, 0.0  ;;  %v662_v39 = vadd.f32 %v660_v33, %v656_v56 }
  0x92   :  { %v663_v37 = vadd.f32 %v661_v49, %v657_v45 }
  0x94   :  { %v665_v19 = vadd.f32 %v663_v37, %v662_v39 }
  0x96   :  { %666 = vst [vmem:[%s2068_s2] sm:$0xff] %v665_v19 }

</bundles_post_ra>
